<compile_context>
chip_gen: v6e
topology: v6e:2x2x1
jax: 0.10.0
libtpu: 0.0.40
codegen_flags: <defaults>
</compile_context>

<pallas_src>
import functools

import jax
import jax.numpy as jnp
from jax.experimental import pallas as pl
from jax.experimental.pallas import tpu as pltpu


K, STRIDE = 3, 2          # conv kernel size / stride (both convs)
C1, C2, NH = 16, 32, 256  # conv1 / conv2 out-channels, fc1 hidden width
NPAD = 128                # lane-dense padded width of the kernel output


def _conv_out(sz, k=K, s=STRIDE):
    return (sz - (k - 1) - 1) // s + 1


# --------------------------------------------------------------------------
# Fused forward kernel (one grid step == one image)
# --------------------------------------------------------------------------
def _make_kernel(cin, h, w):
    """Build the fused per-image kernel for a given input geometry."""
    h1, w1 = _conv_out(h), _conv_out(w)
    h2, w2 = _conv_out(h1), _conv_out(w1)
    s2 = h2 * w2

    def kernel(x_ref, w1_ref, b1_ref, w2_ref, b2_ref,
               wf1_ref, bf1_ref, wf2_ref, bf2_ref, out_ref,
               p1_ref, y1_ref, p2_ref, y2f_ref):
        f32 = jnp.float32

        # ---- conv1 + bn1 + relu: im2col via strided row slices, one GEMM ----
        # x_ref rows are NHWC-flat (row = hh*w + ww, lanes = channels); the
        # tap (kh, kw) for output row (ho, wo) reads input row
        # (2*ho+kh)*w + 2*wo + kw  ==>  a stride-2 sublane slice per (ho, tap).
        for ho in range(h1):
            for kh in range(K):
                for kw in range(K):
                    j = kh * K + kw
                    src = (STRIDE * ho + kh) * w + kw
                    rows = x_ref[pl.ds(src, w1, stride=STRIDE), :]       # (w1, cin)
                    p1_ref[pl.ds(ho * w1, w1), pl.ds(j * cin, cin)] = rows
        y1 = jnp.dot(p1_ref[...], w1_ref[...], preferred_element_type=f32)
        y1_ref[...] = jnp.maximum(y1 + b1_ref[...], 0.0)                 # (h1*w1, C1)

        # ---- conv2 + bn2 + relu ----
        for ho in range(h2):
            for kh in range(K):
                for kw in range(K):
                    j = kh * K + kw
                    src = (STRIDE * ho + kh) * w1 + kw
                    rows = y1_ref[pl.ds(src, w2, stride=STRIDE), :]      # (w2, C1)
                    p2_ref[pl.ds(ho * w2, w2), pl.ds(j * C1, C1)] = rows
        y2 = jnp.dot(p2_ref[...], w2_ref[...], preferred_element_type=f32)
        y2 = jnp.maximum(y2 + b2_ref[...], 0.0)                          # (s2, C2)

        # ---- flatten: NHWC-flat (1, s2*C2) row; wf1 columns were pre-permuted
        #      in prepare_qnet so this matches torch's NCHW flatten + fc1.
        for s in range(s2):
            y2f_ref[:, pl.ds(s * C2, C2)] = y2[s:s + 1, :]

        # ---- fc1 + relu, fc2 (lane-padded to NPAD) ----
        hid = jnp.dot(y2f_ref[...], wf1_ref[...], preferred_element_type=f32)
        hid = jnp.maximum(hid + bf1_ref[...], 0.0)                       # (1, NH)
        q = jnp.dot(hid, wf2_ref[...], preferred_element_type=f32) + bf2_ref[...]
        out_ref[...] = jnp.broadcast_to(q, out_ref.shape)                # (8, NPAD)

    return kernel, (h1, w1, h2, w2, s2)


@functools.partial(jax.jit, static_argnums=(2,))
def qnet_forward(x_nchw, prep, n_actions):
    """QNet forward; `prep` comes from prepare_qnet() (folded/permuted weights)."""
    B, cin, h, w = x_nchw.shape
    kernel, (h1, w1, h2, w2, s2) = _make_kernel(cin, h, w)

    # Static-shape consistency checks (catch prep/input mismatch at trace time).
    assert prep["w1"].shape == (K * K * cin, C1), prep["w1"].shape
    assert prep["wf1"].shape == (s2 * C2, NH), (prep["wf1"].shape, s2)
    assert n_actions <= NPAD

    # NHWC-flatten per image: the only host-side layout op (tiny at 16x16).
    x_rows = x_nchw.transpose(0, 2, 3, 1).reshape(B, h * w, cin)

    weights = (prep["w1"], prep["b1"], prep["w2"], prep["b2"],
               prep["wf1"], prep["bf1"], prep["wf2"], prep["bf2"])

    flops = 2 * B * (h1 * w1 * (K * K * cin) * C1
                     + s2 * (K * K * C1) * C2
                     + (s2 * C2) * NH
                     + NH * NPAD)
    bytes_accessed = 4 * (int(x_rows.size) + sum(int(w_.size) for w_ in weights)
                          + B * 8 * NPAD)

    out = pl.pallas_call(
        kernel,
        out_shape=jax.ShapeDtypeStruct((B, 8, NPAD), jnp.float32),
        grid=(B,),
        in_specs=[pl.BlockSpec((None, h * w, cin), lambda b: (b, 0, 0))]
                 + [pl.BlockSpec(w_.shape, lambda b: (0, 0)) for w_ in weights],
        out_specs=pl.BlockSpec((None, 8, NPAD), lambda b: (b, 0, 0)),
        scratch_shapes=[
            pltpu.VMEM((h1 * w1, K * K * cin), jnp.float32),   # conv1 im2col patch
            pltpu.VMEM((h1 * w1, C1), jnp.float32),            # y1 activation
            pltpu.VMEM((s2, K * K * C1), jnp.float32),         # conv2 im2col patch
            pltpu.VMEM((1, s2 * C2), jnp.float32),             # NHWC-flat y2 row
        ],
        compiler_params=pltpu.CompilerParams(
            dimension_semantics=("parallel",)),
        cost_estimate=pl.CostEstimate(flops=flops, transcendentals=0,
                                      bytes_accessed=bytes_accessed),
    )(x_rows, *weights)

    return out[:, 0, :n_actions]


# --------------------------------------------------------------------------
# Parameter prep: fold BN + 1/255, regroup/permute weights, pad fc2 lanes.
# Batch-independent (no gather matrices, no baked-in batch size).
# --------------------------------------------------------------------------
def prepare_qnet(params, eps=1e-5):
    n_actions = params["wf2"].shape[0]
    cin = params["w1"].shape[1]
    s2 = params["wf1"].shape[1] // C2
    assert n_actions <= NPAD

    sc1 = params["bn1_gamma"] / jnp.sqrt(params["bn1_var"] + eps)
    sc2 = params["bn2_gamma"] / jnp.sqrt(params["bn2_var"] + eps)

    # conv1: fold BN scale and the x/255 input scaling; rows = (kh*3+kw)*cin + c.
    w1 = params["w1"] * sc1[:, None, None, None] / 255.0           # (C1, cin, 3, 3)
    w1_blk = jnp.transpose(w1, (2, 3, 1, 0)).reshape(K * K * cin, C1)
    b1_eff = (params["b1"] - params["bn1_mean"]) * sc1 + params["bn1_beta"]

    # conv2: fold BN scale; rows = (kh*3+kw)*C1 + c.
    w2 = params["w2"] * sc2[:, None, None, None]                   # (C2, C1, 3, 3)
    w2_blk = jnp.transpose(w2, (2, 3, 1, 0)).reshape(K * K * C1, C2)
    b2_eff = (params["b2"] - params["bn2_mean"]) * sc2 + params["bn2_beta"]

    # fc1: torch flattens NCHW (col = c*s2 + s); permute columns so the kernel's
    # NHWC-flat row (lane = s*C2 + c) multiplies correctly: row s*C2 + c.
    wf1_perm = jnp.transpose(params["wf1"].reshape(NH, C2, s2),
                             (2, 1, 0)).reshape(s2 * C2, NH)

    # fc2: pad output lanes to NPAD for unmasked, lane-dense stores.
    wf2_pad = jnp.zeros((NH, NPAD), jnp.float32).at[:, :n_actions].set(
        params["wf2"].T)
    bf2_pad = jnp.zeros((1, NPAD), jnp.float32).at[0, :n_actions].set(
        params["bf2"])

    f32 = jnp.float32
    return {
        "w1": w1_blk.astype(f32), "b1": b1_eff[None, :].astype(f32),
        "w2": w2_blk.astype(f32), "b2": b2_eff[None, :].astype(f32),
        "wf1": wf1_perm.astype(f32), "bf1": params["bf1"][None, :].astype(f32),
        "wf2": wf2_pad.astype(f32), "bf2": bf2_pad.astype(f32),
    }


# --------------------------------------------------------------------------
# Deterministic synthetic parameters (mirrors the PyTorch module's layers)
# --------------------------------------------------------------------------
def init_params(key, n_actions, n_input_ch, input_shape):
    convw = _conv_out(_conv_out(input_shape[0]))
    convh = _conv_out(_conv_out(input_shape[1]))
    lin_in = convw * convh * 32

    ks = jax.random.split(key, 8)
    p = {}
    p["w1"] = jax.random.normal(ks[0], (16, n_input_ch, 3, 3), jnp.float32) * 0.1
    p["b1"] = jax.random.normal(ks[1], (16,), jnp.float32) * 0.01
    p["bn1_gamma"] = jnp.ones((16,), jnp.float32) * 1.1
    p["bn1_beta"] = jnp.ones((16,), jnp.float32) * 0.05
    p["bn1_mean"] = jnp.ones((16,), jnp.float32) * 0.02
    p["bn1_var"] = jnp.ones((16,), jnp.float32) * 0.9
    p["w2"] = jax.random.normal(ks[2], (32, 16, 3, 3), jnp.float32) * 0.1
    p["b2"] = jax.random.normal(ks[3], (32,), jnp.float32) * 0.01
    p["bn2_gamma"] = jnp.ones((32,), jnp.float32) * 0.95
    p["bn2_beta"] = jnp.ones((32,), jnp.float32) * -0.03
    p["bn2_mean"] = jnp.ones((32,), jnp.float32) * 0.01
    p["bn2_var"] = jnp.ones((32,), jnp.float32) * 1.05
    p["wf1"] = jax.random.normal(ks[4], (256, lin_in), jnp.float32) * 0.05
    p["bf1"] = jax.random.normal(ks[5], (256,), jnp.float32) * 0.01
    p["wf2"] = jax.random.normal(ks[6], (n_actions, 256), jnp.float32) * 0.05
    p["bf2"] = jax.random.normal(ks[7], (n_actions,), jnp.float32) * 0.01
    return p


# --------------------------------------------------------------------------
# Pure-JAX reference (literal, unfused translation of QNet.forward).
# HIGHEST precision so the reference itself is accurate f32.
# --------------------------------------------------------------------------
def _im2col_ref(x_nchw, k=K, s=STRIDE):
    B, C, H, W = x_nchw.shape
    Ho, Wo = _conv_out(H), _conv_out(W)
    cols = []
    for kh in range(k):
        for kw in range(k):
            cols.append(x_nchw[:, :, kh:kh + s * Ho:s, kw:kw + s * Wo:s])
    p = jnp.stack(cols, axis=2)                        # (B, C, k*k, Ho, Wo)
    return p.transpose(0, 3, 4, 1, 2).reshape(B * Ho * Wo, C * k * k), Ho, Wo


def qnet_reference(x_nchw, params, eps=1e-5):
    hi = jax.lax.Precision.HIGHEST
    B, Cin, _, _ = x_nchw.shape
    xs = x_nchw / 255.0
    p1, H1, W1 = _im2col_ref(xs)
    y1 = jnp.dot(p1, params["w1"].reshape(16, Cin * 9).T, precision=hi) + params["b1"]
    y1 = (y1 - params["bn1_mean"]) * (
        params["bn1_gamma"] / jnp.sqrt(params["bn1_var"] + eps)) + params["bn1_beta"]
    y1 = jnp.maximum(y1, 0.0).reshape(B, H1, W1, 16).transpose(0, 3, 1, 2)
    p2, H2, W2 = _im2col_ref(y1)
    y2 = jnp.dot(p2, params["w2"].reshape(32, 16 * 9).T, precision=hi) + params["b2"]
    y2 = (y2 - params["bn2_mean"]) * (
        params["bn2_gamma"] / jnp.sqrt(params["bn2_var"] + eps)) + params["bn2_beta"]
    y2 = jnp.maximum(y2, 0.0).reshape(B, H2, W2, 32).transpose(0, 3, 1, 2)
    flat = y2.reshape(B, -1)                            # NCHW flatten (torch)
    h = jnp.maximum(jnp.dot(flat, params["wf1"].T, precision=hi) + params["bf1"], 0.0)
    return jnp.dot(h, params["wf2"].T, precision=hi) + params["bf2"]


# --------------------------------------------------------------------------
if __name__ == "__main__":
    B, Cin, Hh, Ww = 2, 4, 16, 16
    n_actions = 4

    key = jax.random.PRNGKey(0)
    k_in, k_par = jax.random.split(key)
    # image-like input in [0, 255]
    x = jax.random.uniform(k_in, (B, Cin, Hh, Ww), jnp.float32, 0.0, 255.0)
    params = init_params(k_par, n_actions, Cin, (Hh, Ww))

    # One-time prep: BN + 1/255 folding, weight regrouping, fc2 lane padding.
    # TODO(synk): BatchNorm training-mode (batch statistics) is not implemented;
    # eval-mode running stats are folded in, matching QNet.eval() semantics.
    prep = prepare_qnet(params)

    out = jax.block_until_ready(qnet_forward(x, prep, n_actions))
    assert out.shape == (B, n_actions), out.shape
    assert bool(jnp.all(jnp.isfinite(out)))

    # Correctness vs. the unfused pure-JAX reference (tightened to 1e-3 rel).
    ref = jax.block_until_ready(qnet_reference(x, params))
    scale = float(jnp.max(jnp.abs(ref))) + 1e-6
    max_err = float(jnp.max(jnp.abs(out - ref)))
    assert max_err <= 1e-3 * scale + 1e-5, (max_err, scale)

    print("KERNEL_OK")
</pallas_src>

<mosaic_0001>
module attributes {stable_mosaic.version = 11 : i64} {
  func.func @kernel(%arg0: i32, %arg1: memref<1x256x4xf32, #tpu.memory_space<vmem>>, %arg2: memref<36x16xf32, #tpu.memory_space<vmem>>, %arg3: memref<1x16xf32, #tpu.memory_space<vmem>>, %arg4: memref<144x32xf32, #tpu.memory_space<vmem>>, %arg5: memref<1x32xf32, #tpu.memory_space<vmem>>, %arg6: memref<288x256xf32, #tpu.memory_space<vmem>>, %arg7: memref<1x256xf32, #tpu.memory_space<vmem>>, %arg8: memref<256x128xf32, #tpu.memory_space<vmem>>, %arg9: memref<1x128xf32, #tpu.memory_space<vmem>>, %arg10: memref<1x8x128xf32, #tpu.memory_space<vmem>>, %arg11: memref<49x36xf32, #tpu.memory_space<vmem>>, %arg12: memref<49x16xf32, #tpu.memory_space<vmem>>, %arg13: memref<9x144xf32, #tpu.memory_space<vmem>>, %arg14: memref<1x288xf32, #tpu.memory_space<vmem>>) attributes {dimension_semantics = [#tpu.dimension_semantics<parallel>], iteration_bounds = array<i64: 2>, scalar_prefetch = 0 : i64, scratch_operands = 4 : i64, tpu.core_type = #tpu.core_type<tc>, window_params = [{transform_indices = @transform_0, window_bounds = array<i64: 1, 256, 4>}, {pipeline_mode = #tpu.pipeline_mode<synchronous>, transform_indices = @transform_1, window_bounds = array<i64: 36, 16>}, {pipeline_mode = #tpu.pipeline_mode<synchronous>, transform_indices = @transform_2, window_bounds = array<i64: 1, 16>}, {pipeline_mode = #tpu.pipeline_mode<synchronous>, transform_indices = @transform_3, window_bounds = array<i64: 144, 32>}, {pipeline_mode = #tpu.pipeline_mode<synchronous>, transform_indices = @transform_4, window_bounds = array<i64: 1, 32>}, {pipeline_mode = #tpu.pipeline_mode<synchronous>, transform_indices = @transform_5, window_bounds = array<i64: 288, 256>}, {pipeline_mode = #tpu.pipeline_mode<synchronous>, transform_indices = @transform_6, window_bounds = array<i64: 1, 256>}, {pipeline_mode = #tpu.pipeline_mode<synchronous>, transform_indices = @transform_7, window_bounds = array<i64: 256, 128>}, {pipeline_mode = #tpu.pipeline_mode<synchronous>, transform_indices = @transform_8, window_bounds = array<i64: 1, 128>}, {transform_indices = @transform_9, window_bounds = array<i64: 1, 8, 128>}]} {
    %c0 = arith.constant 0 : index
    %c0_0 = arith.constant 0 : index
    %c0_1 = arith.constant 0 : index
    %0 = tpu.strided_load %arg1[%c0, %c0_0, %c0_1] {strides = array<i32: 1, 2, 1>} : memref<1x256x4xf32, #tpu.memory_space<vmem>>, vector<1x7x4xf32>
    %1 = vector.shape_cast %0 : vector<1x7x4xf32> to vector<7x4xf32>
    %c0_2 = arith.constant 0 : index
    %c0_3 = arith.constant 0 : index
    %2 = vector.load %arg11[%c0_2, %c0_3] : memref<49x36xf32, #tpu.memory_space<vmem>>, vector<7x4xf32>
    tpu.vector_store %arg11[%c0_2, %c0_3], %1 {strides = array<i32>} : memref<49x36xf32, #tpu.memory_space<vmem>>, vector<7x4xf32>,
    %c0_4 = arith.constant 0 : index
    %c1 = arith.constant 1 : index
    %c0_5 = arith.constant 0 : index
    %3 = tpu.strided_load %arg1[%c0_4, %c1, %c0_5] {strides = array<i32: 1, 2, 1>} : memref<1x256x4xf32, #tpu.memory_space<vmem>>, vector<1x7x4xf32>
    %4 = vector.shape_cast %3 : vector<1x7x4xf32> to vector<7x4xf32>
    %c0_6 = arith.constant 0 : index
    %c4 = arith.constant 4 : index
    %5 = vector.load %arg11[%c0_6, %c4] : memref<49x36xf32, #tpu.memory_space<vmem>>, vector<7x4xf32>
    tpu.vector_store %arg11[%c0_6, %c4], %4 {strides = array<i32>} : memref<49x36xf32, #tpu.memory_space<vmem>>, vector<7x4xf32>,
    %c0_7 = arith.constant 0 : index
    %c2 = arith.constant 2 : index
    %c0_8 = arith.constant 0 : index
    %6 = tpu.strided_load %arg1[%c0_7, %c2, %c0_8] {strides = array<i32: 1, 2, 1>} : memref<1x256x4xf32, #tpu.memory_space<vmem>>, vector<1x7x4xf32>
    %7 = vector.shape_cast %6 : vector<1x7x4xf32> to vector<7x4xf32>
    %c0_9 = arith.constant 0 : index
    %c8 = arith.constant 8 : index
    %8 = vector.load %arg11[%c0_9, %c8] : memref<49x36xf32, #tpu.memory_space<vmem>>, vector<7x4xf32>
    tpu.vector_store %arg11[%c0_9, %c8], %7 {strides = array<i32>} : memref<49x36xf32, #tpu.memory_space<vmem>>, vector<7x4xf32>,
    %c0_10 = arith.constant 0 : index
    %c16 = arith.constant 16 : index
    %c0_11 = arith.constant 0 : index
    %9 = tpu.strided_load %arg1[%c0_10, %c16, %c0_11] {strides = array<i32: 1, 2, 1>} : memref<1x256x4xf32, #tpu.memory_space<vmem>>, vector<1x7x4xf32>
    %10 = vector.shape_cast %9 : vector<1x7x4xf32> to vector<7x4xf32>
    %c0_12 = arith.constant 0 : index
    %c12 = arith.constant 12 : index
    %11 = vector.load %arg11[%c0_12, %c12] : memref<49x36xf32, #tpu.memory_space<vmem>>, vector<7x4xf32>
    tpu.vector_store %arg11[%c0_12, %c12], %10 {strides = array<i32>} : memref<49x36xf32, #tpu.memory_space<vmem>>, vector<7x4xf32>,
    %c0_13 = arith.constant 0 : index
    %c17 = arith.constant 17 : index
    %c0_14 = arith.constant 0 : index
    %12 = tpu.strided_load %arg1[%c0_13, %c17, %c0_14] {strides = array<i32: 1, 2, 1>} : memref<1x256x4xf32, #tpu.memory_space<vmem>>, vector<1x7x4xf32>
    %13 = vector.shape_cast %12 : vector<1x7x4xf32> to vector<7x4xf32>
    %c0_15 = arith.constant 0 : index
    %c16_16 = arith.constant 16 : index
    %14 = vector.load %arg11[%c0_15, %c16_16] : memref<49x36xf32, #tpu.memory_space<vmem>>, vector<7x4xf32>
    tpu.vector_store %arg11[%c0_15, %c16_16], %13 {strides = array<i32>} : memref<49x36xf32, #tpu.memory_space<vmem>>, vector<7x4xf32>,
    %c0_17 = arith.constant 0 : index
    %c18 = arith.constant 18 : index
    %c0_18 = arith.constant 0 : index
    %15 = tpu.strided_load %arg1[%c0_17, %c18, %c0_18] {strides = array<i32: 1, 2, 1>} : memref<1x256x4xf32, #tpu.memory_space<vmem>>, vector<1x7x4xf32>
    %16 = vector.shape_cast %15 : vector<1x7x4xf32> to vector<7x4xf32>
    %c0_19 = arith.constant 0 : index
    %c20 = arith.constant 20 : index
    %17 = vector.load %arg11[%c0_19, %c20] : memref<49x36xf32, #tpu.memory_space<vmem>>, vector<7x4xf32>
    tpu.vector_store %arg11[%c0_19, %c20], %16 {strides = array<i32>} : memref<49x36xf32, #tpu.memory_space<vmem>>, vector<7x4xf32>,
    %c0_20 = arith.constant 0 : index
    %c32 = arith.constant 32 : index
    %c0_21 = arith.constant 0 : index
    %18 = tpu.strided_load %arg1[%c0_20, %c32, %c0_21] {strides = array<i32: 1, 2, 1>} : memref<1x256x4xf32, #tpu.memory_space<vmem>>, vector<1x7x4xf32>
    %19 = vector.shape_cast %18 : vector<1x7x4xf32> to vector<7x4xf32>
    %c0_22 = arith.constant 0 : index
    %c24 = arith.constant 24 : index
    %20 = vector.load %arg11[%c0_22, %c24] : memref<49x36xf32, #tpu.memory_space<vmem>>, vector<7x4xf32>
    tpu.vector_store %arg11[%c0_22, %c24], %19 {strides = array<i32>} : memref<49x36xf32, #tpu.memory_space<vmem>>, vector<7x4xf32>,
    %c0_23 = arith.constant 0 : index
    %c33 = arith.constant 33 : index
    %c0_24 = arith.constant 0 : index
    %21 = tpu.strided_load %arg1[%c0_23, %c33, %c0_24] {strides = array<i32: 1, 2, 1>} : memref<1x256x4xf32, #tpu.memory_space<vmem>>, vector<1x7x4xf32>
    %22 = vector.shape_cast %21 : vector<1x7x4xf32> to vector<7x4xf32>
    %c0_25 = arith.constant 0 : index
    %c28 = arith.constant 28 : index
    %23 = vector.load %arg11[%c0_25, %c28] : memref<49x36xf32, #tpu.memory_space<vmem>>, vector<7x4xf32>
    tpu.vector_store %arg11[%c0_25, %c28], %22 {strides = array<i32>} : memref<49x36xf32, #tpu.memory_space<vmem>>, vector<7x4xf32>,
    %c0_26 = arith.constant 0 : index
    %c34 = arith.constant 34 : index
    %c0_27 = arith.constant 0 : index
    %24 = tpu.strided_load %arg1[%c0_26, %c34, %c0_27] {strides = array<i32: 1, 2, 1>} : memref<1x256x4xf32, #tpu.memory_space<vmem>>, vector<1x7x4xf32>
    %25 = vector.shape_cast %24 : vector<1x7x4xf32> to vector<7x4xf32>
    %c0_28 = arith.constant 0 : index
    %c32_29 = arith.constant 32 : index
    %26 = vector.load %arg11[%c0_28, %c32_29] : memref<49x36xf32, #tpu.memory_space<vmem>>, vector<7x4xf32>
    tpu.vector_store %arg11[%c0_28, %c32_29], %25 {strides = array<i32>} : memref<49x36xf32, #tpu.memory_space<vmem>>, vector<7x4xf32>,
    %c0_30 = arith.constant 0 : index
    %c32_31 = arith.constant 32 : index
    %c0_32 = arith.constant 0 : index
    %27 = tpu.strided_load %arg1[%c0_30, %c32_31, %c0_32] {strides = array<i32: 1, 2, 1>} : memref<1x256x4xf32, #tpu.memory_space<vmem>>, vector<1x7x4xf32>
    %28 = vector.shape_cast %27 : vector<1x7x4xf32> to vector<7x4xf32>
    %c7 = arith.constant 7 : index
    %c0_33 = arith.constant 0 : index
    %29 = vector.load %arg11[%c7, %c0_33] : memref<49x36xf32, #tpu.memory_space<vmem>>, vector<7x4xf32>
    tpu.vector_store %arg11[%c7, %c0_33], %28 {strides = array<i32>} : memref<49x36xf32, #tpu.memory_space<vmem>>, vector<7x4xf32>,
    %c0_34 = arith.constant 0 : index
    %c33_35 = arith.constant 33 : index
    %c0_36 = arith.constant 0 : index
    %30 = tpu.strided_load %arg1[%c0_34, %c33_35, %c0_36] {strides = array<i32: 1, 2, 1>} : memref<1x256x4xf32, #tpu.memory_space<vmem>>, vector<1x7x4xf32>
    %31 = vector.shape_cast %30 : vector<1x7x4xf32> to vector<7x4xf32>
    %c7_37 = arith.constant 7 : index
    %c4_38 = arith.constant 4 : index
    %32 = vector.load %arg11[%c7_37, %c4_38] : memref<49x36xf32, #tpu.memory_space<vmem>>, vector<7x4xf32>
    tpu.vector_store %arg11[%c7_37, %c4_38], %31 {strides = array<i32>} : memref<49x36xf32, #tpu.memory_space<vmem>>, vector<7x4xf32>,
    %c0_39 = arith.constant 0 : index
    %c34_40 = arith.constant 34 : index
    %c0_41 = arith.constant 0 : index
    %33 = tpu.strided_load %arg1[%c0_39, %c34_40, %c0_41] {strides = array<i32: 1, 2, 1>} : memref<1x256x4xf32, #tpu.memory_space<vmem>>, vector<1x7x4xf32>
    %34 = vector.shape_cast %33 : vector<1x7x4xf32> to vector<7x4xf32>
    %c7_42 = arith.constant 7 : index
    %c8_43 = arith.constant 8 : index
    %35 = vector.load %arg11[%c7_42, %c8_43] : memref<49x36xf32, #tpu.memory_space<vmem>>, vector<7x4xf32>
    tpu.vector_store %arg11[%c7_42, %c8_43], %34 {strides = array<i32>} : memref<49x36xf32, #tpu.memory_space<vmem>>, vector<7x4xf32>,
    %c0_44 = arith.constant 0 : index
    %c48 = arith.constant 48 : index
    %c0_45 = arith.constant 0 : index
    %36 = tpu.strided_load %arg1[%c0_44, %c48, %c0_45] {strides = array<i32: 1, 2, 1>} : memref<1x256x4xf32, #tpu.memory_space<vmem>>, vector<1x7x4xf32>
    %37 = vector.shape_cast %36 : vector<1x7x4xf32> to vector<7x4xf32>
    %c7_46 = arith.constant 7 : index
    %c12_47 = arith.constant 12 : index
    %38 = vector.load %arg11[%c7_46, %c12_47] : memref<49x36xf32, #tpu.memory_space<vmem>>, vector<7x4xf32>
    tpu.vector_store %arg11[%c7_46, %c12_47], %37 {strides = array<i32>} : memref<49x36xf32, #tpu.memory_space<vmem>>, vector<7x4xf32>,
    %c0_48 = arith.constant 0 : index
    %c49 = arith.constant 49 : index
    %c0_49 = arith.constant 0 : index
    %39 = tpu.strided_load %arg1[%c0_48, %c49, %c0_49] {strides = array<i32: 1, 2, 1>} : memref<1x256x4xf32, #tpu.memory_space<vmem>>, vector<1x7x4xf32>
    %40 = vector.shape_cast %39 : vector<1x7x4xf32> to vector<7x4xf32>
    %c7_50 = arith.constant 7 : index
    %c16_51 = arith.constant 16 : index
    %41 = vector.load %arg11[%c7_50, %c16_51] : memref<49x36xf32, #tpu.memory_space<vmem>>, vector<7x4xf32>
    tpu.vector_store %arg11[%c7_50, %c16_51], %40 {strides = array<i32>} : memref<49x36xf32, #tpu.memory_space<vmem>>, vector<7x4xf32>,
    %c0_52 = arith.constant 0 : index
    %c50 = arith.constant 50 : index
    %c0_53 = arith.constant 0 : index
    %42 = tpu.strided_load %arg1[%c0_52, %c50, %c0_53] {strides = array<i32: 1, 2, 1>} : memref<1x256x4xf32, #tpu.memory_space<vmem>>, vector<1x7x4xf32>
    %43 = vector.shape_cast %42 : vector<1x7x4xf32> to vector<7x4xf32>
    %c7_54 = arith.constant 7 : index
    %c20_55 = arith.constant 20 : index
    %44 = vector.load %arg11[%c7_54, %c20_55] : memref<49x36xf32, #tpu.memory_space<vmem>>, vector<7x4xf32>
    tpu.vector_store %arg11[%c7_54, %c20_55], %43 {strides = array<i32>} : memref<49x36xf32, #tpu.memory_space<vmem>>, vector<7x4xf32>,
    %c0_56 = arith.constant 0 : index
    %c64 = arith.constant 64 : index
    %c0_57 = arith.constant 0 : index
    %45 = tpu.strided_load %arg1[%c0_56, %c64, %c0_57] {strides = array<i32: 1, 2, 1>} : memref<1x256x4xf32, #tpu.memory_space<vmem>>, vector<1x7x4xf32>
    %46 = vector.shape_cast %45 : vector<1x7x4xf32> to vector<7x4xf32>
    %c7_58 = arith.constant 7 : index
    %c24_59 = arith.constant 24 : index
    %47 = vector.load %arg11[%c7_58, %c24_59] : memref<49x36xf32, #tpu.memory_space<vmem>>, vector<7x4xf32>
    tpu.vector_store %arg11[%c7_58, %c24_59], %46 {strides = array<i32>} : memref<49x36xf32, #tpu.memory_space<vmem>>, vector<7x4xf32>,
    %c0_60 = arith.constant 0 : index
    %c65 = arith.constant 65 : index
    %c0_61 = arith.constant 0 : index
    %48 = tpu.strided_load %arg1[%c0_60, %c65, %c0_61] {strides = array<i32: 1, 2, 1>} : memref<1x256x4xf32, #tpu.memory_space<vmem>>, vector<1x7x4xf32>
    %49 = vector.shape_cast %48 : vector<1x7x4xf32> to vector<7x4xf32>
    %c7_62 = arith.constant 7 : index
    %c28_63 = arith.constant 28 : index
    %50 = vector.load %arg11[%c7_62, %c28_63] : memref<49x36xf32, #tpu.memory_space<vmem>>, vector<7x4xf32>
    tpu.vector_store %arg11[%c7_62, %c28_63], %49 {strides = array<i32>} : memref<49x36xf32, #tpu.memory_space<vmem>>, vector<7x4xf32>,
    %c0_64 = arith.constant 0 : index
    %c66 = arith.constant 66 : index
    %c0_65 = arith.constant 0 : index
    %51 = tpu.strided_load %arg1[%c0_64, %c66, %c0_65] {strides = array<i32: 1, 2, 1>} : memref<1x256x4xf32, #tpu.memory_space<vmem>>, vector<1x7x4xf32>
    %52 = vector.shape_cast %51 : vector<1x7x4xf32> to vector<7x4xf32>
    %c7_66 = arith.constant 7 : index
    %c32_67 = arith.constant 32 : index
    %53 = vector.load %arg11[%c7_66, %c32_67] : memref<49x36xf32, #tpu.memory_space<vmem>>, vector<7x4xf32>
    tpu.vector_store %arg11[%c7_66, %c32_67], %52 {strides = array<i32>} : memref<49x36xf32, #tpu.memory_space<vmem>>, vector<7x4xf32>,
    %c0_68 = arith.constant 0 : index
    %c64_69 = arith.constant 64 : index
    %c0_70 = arith.constant 0 : index
    %54 = tpu.strided_load %arg1[%c0_68, %c64_69, %c0_70] {strides = array<i32: 1, 2, 1>} : memref<1x256x4xf32, #tpu.memory_space<vmem>>, vector<1x7x4xf32>
    %55 = vector.shape_cast %54 : vector<1x7x4xf32> to vector<7x4xf32>
    %c14 = arith.constant 14 : index
    %c0_71 = arith.constant 0 : index
    %56 = vector.load %arg11[%c14, %c0_71] : memref<49x36xf32, #tpu.memory_space<vmem>>, vector<7x4xf32>
    tpu.vector_store %arg11[%c14, %c0_71], %55 {strides = array<i32>} : memref<49x36xf32, #tpu.memory_space<vmem>>, vector<7x4xf32>,
    %c0_72 = arith.constant 0 : index
    %c65_73 = arith.constant 65 : index
    %c0_74 = arith.constant 0 : index
    %57 = tpu.strided_load %arg1[%c0_72, %c65_73, %c0_74] {strides = array<i32: 1, 2, 1>} : memref<1x256x4xf32, #tpu.memory_space<vmem>>, vector<1x7x4xf32>
    %58 = vector.shape_cast %57 : vector<1x7x4xf32> to vector<7x4xf32>
    %c14_75 = arith.constant 14 : index
    %c4_76 = arith.constant 4 : index
    %59 = vector.load %arg11[%c14_75, %c4_76] : memref<49x36xf32, #tpu.memory_space<vmem>>, vector<7x4xf32>
    tpu.vector_store %arg11[%c14_75, %c4_76], %58 {strides = array<i32>} : memref<49x36xf32, #tpu.memory_space<vmem>>, vector<7x4xf32>,
    %c0_77 = arith.constant 0 : index
    %c66_78 = arith.constant 66 : index
    %c0_79 = arith.constant 0 : index
    %60 = tpu.strided_load %arg1[%c0_77, %c66_78, %c0_79] {strides = array<i32: 1, 2, 1>} : memref<1x256x4xf32, #tpu.memory_space<vmem>>, vector<1x7x4xf32>
    %61 = vector.shape_cast %60 : vector<1x7x4xf32> to vector<7x4xf32>
    %c14_80 = arith.constant 14 : index
    %c8_81 = arith.constant 8 : index
    %62 = vector.load %arg11[%c14_80, %c8_81] : memref<49x36xf32, #tpu.memory_space<vmem>>, vector<7x4xf32>
    tpu.vector_store %arg11[%c14_80, %c8_81], %61 {strides = array<i32>} : memref<49x36xf32, #tpu.memory_space<vmem>>, vector<7x4xf32>,
    %c0_82 = arith.constant 0 : index
    %c80 = arith.constant 80 : index
    %c0_83 = arith.constant 0 : index
    %63 = tpu.strided_load %arg1[%c0_82, %c80, %c0_83] {strides = array<i32: 1, 2, 1>} : memref<1x256x4xf32, #tpu.memory_space<vmem>>, vector<1x7x4xf32>
    %64 = vector.shape_cast %63 : vector<1x7x4xf32> to vector<7x4xf32>
    %c14_84 = arith.constant 14 : index
    %c12_85 = arith.constant 12 : index
    %65 = vector.load %arg11[%c14_84, %c12_85] : memref<49x36xf32, #tpu.memory_space<vmem>>, vector<7x4xf32>
    tpu.vector_store %arg11[%c14_84, %c12_85], %64 {strides = array<i32>} : memref<49x36xf32, #tpu.memory_space<vmem>>, vector<7x4xf32>,
    %c0_86 = arith.constant 0 : index
    %c81 = arith.constant 81 : index
    %c0_87 = arith.constant 0 : index
    %66 = tpu.strided_load %arg1[%c0_86, %c81, %c0_87] {strides = array<i32: 1, 2, 1>} : memref<1x256x4xf32, #tpu.memory_space<vmem>>, vector<1x7x4xf32>
    %67 = vector.shape_cast %66 : vector<1x7x4xf32> to vector<7x4xf32>
    %c14_88 = arith.constant 14 : index
    %c16_89 = arith.constant 16 : index
    %68 = vector.load %arg11[%c14_88, %c16_89] : memref<49x36xf32, #tpu.memory_space<vmem>>, vector<7x4xf32>
    tpu.vector_store %arg11[%c14_88, %c16_89], %67 {strides = array<i32>} : memref<49x36xf32, #tpu.memory_space<vmem>>, vector<7x4xf32>,
    %c0_90 = arith.constant 0 : index
    %c82 = arith.constant 82 : index
    %c0_91 = arith.constant 0 : index
    %69 = tpu.strided_load %arg1[%c0_90, %c82, %c0_91] {strides = array<i32: 1, 2, 1>} : memref<1x256x4xf32, #tpu.memory_space<vmem>>, vector<1x7x4xf32>
    %70 = vector.shape_cast %69 : vector<1x7x4xf32> to vector<7x4xf32>
    %c14_92 = arith.constant 14 : index
    %c20_93 = arith.constant 20 : index
    %71 = vector.load %arg11[%c14_92, %c20_93] : memref<49x36xf32, #tpu.memory_space<vmem>>, vector<7x4xf32>
    tpu.vector_store %arg11[%c14_92, %c20_93], %70 {strides = array<i32>} : memref<49x36xf32, #tpu.memory_space<vmem>>, vector<7x4xf32>,
    %c0_94 = arith.constant 0 : index
    %c96 = arith.constant 96 : index
    %c0_95 = arith.constant 0 : index
    %72 = tpu.strided_load %arg1[%c0_94, %c96, %c0_95] {strides = array<i32: 1, 2, 1>} : memref<1x256x4xf32, #tpu.memory_space<vmem>>, vector<1x7x4xf32>
    %73 = vector.shape_cast %72 : vector<1x7x4xf32> to vector<7x4xf32>
    %c14_96 = arith.constant 14 : index
    %c24_97 = arith.constant 24 : index
    %74 = vector.load %arg11[%c14_96, %c24_97] : memref<49x36xf32, #tpu.memory_space<vmem>>, vector<7x4xf32>
    tpu.vector_store %arg11[%c14_96, %c24_97], %73 {strides = array<i32>} : memref<49x36xf32, #tpu.memory_space<vmem>>, vector<7x4xf32>,
    %c0_98 = arith.constant 0 : index
    %c97 = arith.constant 97 : index
    %c0_99 = arith.constant 0 : index
    %75 = tpu.strided_load %arg1[%c0_98, %c97, %c0_99] {strides = array<i32: 1, 2, 1>} : memref<1x256x4xf32, #tpu.memory_space<vmem>>, vector<1x7x4xf32>
    %76 = vector.shape_cast %75 : vector<1x7x4xf32> to vector<7x4xf32>
    %c14_100 = arith.constant 14 : index
    %c28_101 = arith.constant 28 : index
    %77 = vector.load %arg11[%c14_100, %c28_101] : memref<49x36xf32, #tpu.memory_space<vmem>>, vector<7x4xf32>
    tpu.vector_store %arg11[%c14_100, %c28_101], %76 {strides = array<i32>} : memref<49x36xf32, #tpu.memory_space<vmem>>, vector<7x4xf32>,
    %c0_102 = arith.constant 0 : index
    %c98 = arith.constant 98 : index
    %c0_103 = arith.constant 0 : index
    %78 = tpu.strided_load %arg1[%c0_102, %c98, %c0_103] {strides = array<i32: 1, 2, 1>} : memref<1x256x4xf32, #tpu.memory_space<vmem>>, vector<1x7x4xf32>
    %79 = vector.shape_cast %78 : vector<1x7x4xf32> to vector<7x4xf32>
    %c14_104 = arith.constant 14 : index
    %c32_105 = arith.constant 32 : index
    %80 = vector.load %arg11[%c14_104, %c32_105] : memref<49x36xf32, #tpu.memory_space<vmem>>, vector<7x4xf32>
    tpu.vector_store %arg11[%c14_104, %c32_105], %79 {strides = array<i32>} : memref<49x36xf32, #tpu.memory_space<vmem>>, vector<7x4xf32>,
    %c0_106 = arith.constant 0 : index
    %c96_107 = arith.constant 96 : index
    %c0_108 = arith.constant 0 : index
    %81 = tpu.strided_load %arg1[%c0_106, %c96_107, %c0_108] {strides = array<i32: 1, 2, 1>} : memref<1x256x4xf32, #tpu.memory_space<vmem>>, vector<1x7x4xf32>
    %82 = vector.shape_cast %81 : vector<1x7x4xf32> to vector<7x4xf32>
    %c21 = arith.constant 21 : index
    %c0_109 = arith.constant 0 : index
    %83 = vector.load %arg11[%c21, %c0_109] : memref<49x36xf32, #tpu.memory_space<vmem>>, vector<7x4xf32>
    tpu.vector_store %arg11[%c21, %c0_109], %82 {strides = array<i32>} : memref<49x36xf32, #tpu.memory_space<vmem>>, vector<7x4xf32>,
    %c0_110 = arith.constant 0 : index
    %c97_111 = arith.constant 97 : index
    %c0_112 = arith.constant 0 : index
    %84 = tpu.strided_load %arg1[%c0_110, %c97_111, %c0_112] {strides = array<i32: 1, 2, 1>} : memref<1x256x4xf32, #tpu.memory_space<vmem>>, vector<1x7x4xf32>
    %85 = vector.shape_cast %84 : vector<1x7x4xf32> to vector<7x4xf32>
    %c21_113 = arith.constant 21 : index
    %c4_114 = arith.constant 4 : index
    %86 = vector.load %arg11[%c21_113, %c4_114] : memref<49x36xf32, #tpu.memory_space<vmem>>, vector<7x4xf32>
    tpu.vector_store %arg11[%c21_113, %c4_114], %85 {strides = array<i32>} : memref<49x36xf32, #tpu.memory_space<vmem>>, vector<7x4xf32>,
    %c0_115 = arith.constant 0 : index
    %c98_116 = arith.constant 98 : index
    %c0_117 = arith.constant 0 : index
    %87 = tpu.strided_load %arg1[%c0_115, %c98_116, %c0_117] {strides = array<i32: 1, 2, 1>} : memref<1x256x4xf32, #tpu.memory_space<vmem>>, vector<1x7x4xf32>
    %88 = vector.shape_cast %87 : vector<1x7x4xf32> to vector<7x4xf32>
    %c21_118 = arith.constant 21 : index
    %c8_119 = arith.constant 8 : index
    %89 = vector.load %arg11[%c21_118, %c8_119] : memref<49x36xf32, #tpu.memory_space<vmem>>, vector<7x4xf32>
    tpu.vector_store %arg11[%c21_118, %c8_119], %88 {strides = array<i32>} : memref<49x36xf32, #tpu.memory_space<vmem>>, vector<7x4xf32>,
    %c0_120 = arith.constant 0 : index
    %c112 = arith.constant 112 : index
    %c0_121 = arith.constant 0 : index
    %90 = tpu.strided_load %arg1[%c0_120, %c112, %c0_121] {strides = array<i32: 1, 2, 1>} : memref<1x256x4xf32, #tpu.memory_space<vmem>>, vector<1x7x4xf32>
    %91 = vector.shape_cast %90 : vector<1x7x4xf32> to vector<7x4xf32>
    %c21_122 = arith.constant 21 : index
    %c12_123 = arith.constant 12 : index
    %92 = vector.load %arg11[%c21_122, %c12_123] : memref<49x36xf32, #tpu.memory_space<vmem>>, vector<7x4xf32>
    tpu.vector_store %arg11[%c21_122, %c12_123], %91 {strides = array<i32>} : memref<49x36xf32, #tpu.memory_space<vmem>>, vector<7x4xf32>,
    %c0_124 = arith.constant 0 : index
    %c113 = arith.constant 113 : index
    %c0_125 = arith.constant 0 : index
    %93 = tpu.strided_load %arg1[%c0_124, %c113, %c0_125] {strides = array<i32: 1, 2, 1>} : memref<1x256x4xf32, #tpu.memory_space<vmem>>, vector<1x7x4xf32>
    %94 = vector.shape_cast %93 : vector<1x7x4xf32> to vector<7x4xf32>
    %c21_126 = arith.constant 21 : index
    %c16_127 = arith.constant 16 : index
    %95 = vector.load %arg11[%c21_126, %c16_127] : memref<49x36xf32, #tpu.memory_space<vmem>>, vector<7x4xf32>
    tpu.vector_store %arg11[%c21_126, %c16_127], %94 {strides = array<i32>} : memref<49x36xf32, #tpu.memory_space<vmem>>, vector<7x4xf32>,
    %c0_128 = arith.constant 0 : index
    %c114 = arith.constant 114 : index
    %c0_129 = arith.constant 0 : index
    %96 = tpu.strided_load %arg1[%c0_128, %c114, %c0_129] {strides = array<i32: 1, 2, 1>} : memref<1x256x4xf32, #tpu.memory_space<vmem>>, vector<1x7x4xf32>
    %97 = vector.shape_cast %96 : vector<1x7x4xf32> to vector<7x4xf32>
    %c21_130 = arith.constant 21 : index
    %c20_131 = arith.constant 20 : index
    %98 = vector.load %arg11[%c21_130, %c20_131] : memref<49x36xf32, #tpu.memory_space<vmem>>, vector<7x4xf32>
    tpu.vector_store %arg11[%c21_130, %c20_131], %97 {strides = array<i32>} : memref<49x36xf32, #tpu.memory_space<vmem>>, vector<7x4xf32>,
    %c0_132 = arith.constant 0 : index
    %c128 = arith.constant 128 : index
    %c0_133 = arith.constant 0 : index
    %99 = tpu.strided_load %arg1[%c0_132, %c128, %c0_133] {strides = array<i32: 1, 2, 1>} : memref<1x256x4xf32, #tpu.memory_space<vmem>>, vector<1x7x4xf32>
    %100 = vector.shape_cast %99 : vector<1x7x4xf32> to vector<7x4xf32>
    %c21_134 = arith.constant 21 : index
    %c24_135 = arith.constant 24 : index
    %101 = vector.load %arg11[%c21_134, %c24_135] : memref<49x36xf32, #tpu.memory_space<vmem>>, vector<7x4xf32>
    tpu.vector_store %arg11[%c21_134, %c24_135], %100 {strides = array<i32>} : memref<49x36xf32, #tpu.memory_space<vmem>>, vector<7x4xf32>,
    %c0_136 = arith.constant 0 : index
    %c129 = arith.constant 129 : index
    %c0_137 = arith.constant 0 : index
    %102 = tpu.strided_load %arg1[%c0_136, %c129, %c0_137] {strides = array<i32: 1, 2, 1>} : memref<1x256x4xf32, #tpu.memory_space<vmem>>, vector<1x7x4xf32>
    %103 = vector.shape_cast %102 : vector<1x7x4xf32> to vector<7x4xf32>
    %c21_138 = arith.constant 21 : index
    %c28_139 = arith.constant 28 : index
    %104 = vector.load %arg11[%c21_138, %c28_139] : memref<49x36xf32, #tpu.memory_space<vmem>>, vector<7x4xf32>
    tpu.vector_store %arg11[%c21_138, %c28_139], %103 {strides = array<i32>} : memref<49x36xf32, #tpu.memory_space<vmem>>, vector<7x4xf32>,
    %c0_140 = arith.constant 0 : index
    %c130 = arith.constant 130 : index
    %c0_141 = arith.constant 0 : index
    %105 = tpu.strided_load %arg1[%c0_140, %c130, %c0_141] {strides = array<i32: 1, 2, 1>} : memref<1x256x4xf32, #tpu.memory_space<vmem>>, vector<1x7x4xf32>
    %106 = vector.shape_cast %105 : vector<1x7x4xf32> to vector<7x4xf32>
    %c21_142 = arith.constant 21 : index
    %c32_143 = arith.constant 32 : index
    %107 = vector.load %arg11[%c21_142, %c32_143] : memref<49x36xf32, #tpu.memory_space<vmem>>, vector<7x4xf32>
    tpu.vector_store %arg11[%c21_142, %c32_143], %106 {strides = array<i32>} : memref<49x36xf32, #tpu.memory_space<vmem>>, vector<7x4xf32>,
    %c0_144 = arith.constant 0 : index
    %c128_145 = arith.constant 128 : index
    %c0_146 = arith.constant 0 : index
    %108 = tpu.strided_load %arg1[%c0_144, %c128_145, %c0_146] {strides = array<i32: 1, 2, 1>} : memref<1x256x4xf32, #tpu.memory_space<vmem>>, vector<1x7x4xf32>
    %109 = vector.shape_cast %108 : vector<1x7x4xf32> to vector<7x4xf32>
    %c28_147 = arith.constant 28 : index
    %c0_148 = arith.constant 0 : index
    %110 = vector.load %arg11[%c28_147, %c0_148] : memref<49x36xf32, #tpu.memory_space<vmem>>, vector<7x4xf32>
    tpu.vector_store %arg11[%c28_147, %c0_148], %109 {strides = array<i32>} : memref<49x36xf32, #tpu.memory_space<vmem>>, vector<7x4xf32>,
    %c0_149 = arith.constant 0 : index
    %c129_150 = arith.constant 129 : index
    %c0_151 = arith.constant 0 : index
    %111 = tpu.strided_load %arg1[%c0_149, %c129_150, %c0_151] {strides = array<i32: 1, 2, 1>} : memref<1x256x4xf32, #tpu.memory_space<vmem>>, vector<1x7x4xf32>
    %112 = vector.shape_cast %111 : vector<1x7x4xf32> to vector<7x4xf32>
    %c28_152 = arith.constant 28 : index
    %c4_153 = arith.constant 4 : index
    %113 = vector.load %arg11[%c28_152, %c4_153] : memref<49x36xf32, #tpu.memory_space<vmem>>, vector<7x4xf32>
    tpu.vector_store %arg11[%c28_152, %c4_153], %112 {strides = array<i32>} : memref<49x36xf32, #tpu.memory_space<vmem>>, vector<7x4xf32>,
    %c0_154 = arith.constant 0 : index
    %c130_155 = arith.constant 130 : index
    %c0_156 = arith.constant 0 : index
    %114 = tpu.strided_load %arg1[%c0_154, %c130_155, %c0_156] {strides = array<i32: 1, 2, 1>} : memref<1x256x4xf32, #tpu.memory_space<vmem>>, vector<1x7x4xf32>
    %115 = vector.shape_cast %114 : vector<1x7x4xf32> to vector<7x4xf32>
    %c28_157 = arith.constant 28 : index
    %c8_158 = arith.constant 8 : index
    %116 = vector.load %arg11[%c28_157, %c8_158] : memref<49x36xf32, #tpu.memory_space<vmem>>, vector<7x4xf32>
    tpu.vector_store %arg11[%c28_157, %c8_158], %115 {strides = array<i32>} : memref<49x36xf32, #tpu.memory_space<vmem>>, vector<7x4xf32>,
    %c0_159 = arith.constant 0 : index
    %c144 = arith.constant 144 : index
    %c0_160 = arith.constant 0 : index
    %117 = tpu.strided_load %arg1[%c0_159, %c144, %c0_160] {strides = array<i32: 1, 2, 1>} : memref<1x256x4xf32, #tpu.memory_space<vmem>>, vector<1x7x4xf32>
    %118 = vector.shape_cast %117 : vector<1x7x4xf32> to vector<7x4xf32>
    %c28_161 = arith.constant 28 : index
    %c12_162 = arith.constant 12 : index
    %119 = vector.load %arg11[%c28_161, %c12_162] : memref<49x36xf32, #tpu.memory_space<vmem>>, vector<7x4xf32>
    tpu.vector_store %arg11[%c28_161, %c12_162], %118 {strides = array<i32>} : memref<49x36xf32, #tpu.memory_space<vmem>>, vector<7x4xf32>,
    %c0_163 = arith.constant 0 : index
    %c145 = arith.constant 145 : index
    %c0_164 = arith.constant 0 : index
    %120 = tpu.strided_load %arg1[%c0_163, %c145, %c0_164] {strides = array<i32: 1, 2, 1>} : memref<1x256x4xf32, #tpu.memory_space<vmem>>, vector<1x7x4xf32>
    %121 = vector.shape_cast %120 : vector<1x7x4xf32> to vector<7x4xf32>
    %c28_165 = arith.constant 28 : index
    %c16_166 = arith.constant 16 : index
    %122 = vector.load %arg11[%c28_165, %c16_166] : memref<49x36xf32, #tpu.memory_space<vmem>>, vector<7x4xf32>
    tpu.vector_store %arg11[%c28_165, %c16_166], %121 {strides = array<i32>} : memref<49x36xf32, #tpu.memory_space<vmem>>, vector<7x4xf32>,
    %c0_167 = arith.constant 0 : index
    %c146 = arith.constant 146 : index
    %c0_168 = arith.constant 0 : index
    %123 = tpu.strided_load %arg1[%c0_167, %c146, %c0_168] {strides = array<i32: 1, 2, 1>} : memref<1x256x4xf32, #tpu.memory_space<vmem>>, vector<1x7x4xf32>
    %124 = vector.shape_cast %123 : vector<1x7x4xf32> to vector<7x4xf32>
    %c28_169 = arith.constant 28 : index
    %c20_170 = arith.constant 20 : index
    %125 = vector.load %arg11[%c28_169, %c20_170] : memref<49x36xf32, #tpu.memory_space<vmem>>, vector<7x4xf32>
    tpu.vector_store %arg11[%c28_169, %c20_170], %124 {strides = array<i32>} : memref<49x36xf32, #tpu.memory_space<vmem>>, vector<7x4xf32>,
    %c0_171 = arith.constant 0 : index
    %c160 = arith.constant 160 : index
    %c0_172 = arith.constant 0 : index
    %126 = tpu.strided_load %arg1[%c0_171, %c160, %c0_172] {strides = array<i32: 1, 2, 1>} : memref<1x256x4xf32, #tpu.memory_space<vmem>>, vector<1x7x4xf32>
    %127 = vector.shape_cast %126 : vector<1x7x4xf32> to vector<7x4xf32>
    %c28_173 = arith.constant 28 : index
    %c24_174 = arith.constant 24 : index
    %128 = vector.load %arg11[%c28_173, %c24_174] : memref<49x36xf32, #tpu.memory_space<vmem>>, vector<7x4xf32>
    tpu.vector_store %arg11[%c28_173, %c24_174], %127 {strides = array<i32>} : memref<49x36xf32, #tpu.memory_space<vmem>>, vector<7x4xf32>,
    %c0_175 = arith.constant 0 : index
    %c161 = arith.constant 161 : index
    %c0_176 = arith.constant 0 : index
    %129 = tpu.strided_load %arg1[%c0_175, %c161, %c0_176] {strides = array<i32: 1, 2, 1>} : memref<1x256x4xf32, #tpu.memory_space<vmem>>, vector<1x7x4xf32>
    %130 = vector.shape_cast %129 : vector<1x7x4xf32> to vector<7x4xf32>
    %c28_177 = arith.constant 28 : index
    %c28_178 = arith.constant 28 : index
    %131 = vector.load %arg11[%c28_177, %c28_178] : memref<49x36xf32, #tpu.memory_space<vmem>>, vector<7x4xf32>
    tpu.vector_store %arg11[%c28_177, %c28_178], %130 {strides = array<i32>} : memref<49x36xf32, #tpu.memory_space<vmem>>, vector<7x4xf32>,
    %c0_179 = arith.constant 0 : index
    %c162 = arith.constant 162 : index
    %c0_180 = arith.constant 0 : index
    %132 = tpu.strided_load %arg1[%c0_179, %c162, %c0_180] {strides = array<i32: 1, 2, 1>} : memref<1x256x4xf32, #tpu.memory_space<vmem>>, vector<1x7x4xf32>
    %133 = vector.shape_cast %132 : vector<1x7x4xf32> to vector<7x4xf32>
    %c28_181 = arith.constant 28 : index
    %c32_182 = arith.constant 32 : index
    %134 = vector.load %arg11[%c28_181, %c32_182] : memref<49x36xf32, #tpu.memory_space<vmem>>, vector<7x4xf32>
    tpu.vector_store %arg11[%c28_181, %c32_182], %133 {strides = array<i32>} : memref<49x36xf32, #tpu.memory_space<vmem>>, vector<7x4xf32>,
    %c0_183 = arith.constant 0 : index
    %c160_184 = arith.constant 160 : index
    %c0_185 = arith.constant 0 : index
    %135 = tpu.strided_load %arg1[%c0_183, %c160_184, %c0_185] {strides = array<i32: 1, 2, 1>} : memref<1x256x4xf32, #tpu.memory_space<vmem>>, vector<1x7x4xf32>
    %136 = vector.shape_cast %135 : vector<1x7x4xf32> to vector<7x4xf32>
    %c35 = arith.constant 35 : index
    %c0_186 = arith.constant 0 : index
    %137 = vector.load %arg11[%c35, %c0_186] : memref<49x36xf32, #tpu.memory_space<vmem>>, vector<7x4xf32>
    tpu.vector_store %arg11[%c35, %c0_186], %136 {strides = array<i32>} : memref<49x36xf32, #tpu.memory_space<vmem>>, vector<7x4xf32>,
    %c0_187 = arith.constant 0 : index
    %c161_188 = arith.constant 161 : index
    %c0_189 = arith.constant 0 : index
    %138 = tpu.strided_load %arg1[%c0_187, %c161_188, %c0_189] {strides = array<i32: 1, 2, 1>} : memref<1x256x4xf32, #tpu.memory_space<vmem>>, vector<1x7x4xf32>
    %139 = vector.shape_cast %138 : vector<1x7x4xf32> to vector<7x4xf32>
    %c35_190 = arith.constant 35 : index
    %c4_191 = arith.constant 4 : index
    %140 = vector.load %arg11[%c35_190, %c4_191] : memref<49x36xf32, #tpu.memory_space<vmem>>, vector<7x4xf32>
    tpu.vector_store %arg11[%c35_190, %c4_191], %139 {strides = array<i32>} : memref<49x36xf32, #tpu.memory_space<vmem>>, vector<7x4xf32>,
    %c0_192 = arith.constant 0 : index
    %c162_193 = arith.constant 162 : index
    %c0_194 = arith.constant 0 : index
    %141 = tpu.strided_load %arg1[%c0_192, %c162_193, %c0_194] {strides = array<i32: 1, 2, 1>} : memref<1x256x4xf32, #tpu.memory_space<vmem>>, vector<1x7x4xf32>
    %142 = vector.shape_cast %141 : vector<1x7x4xf32> to vector<7x4xf32>
    %c35_195 = arith.constant 35 : index
    %c8_196 = arith.constant 8 : index
    %143 = vector.load %arg11[%c35_195, %c8_196] : memref<49x36xf32, #tpu.memory_space<vmem>>, vector<7x4xf32>
    tpu.vector_store %arg11[%c35_195, %c8_196], %142 {strides = array<i32>} : memref<49x36xf32, #tpu.memory_space<vmem>>, vector<7x4xf32>,
    %c0_197 = arith.constant 0 : index
    %c176 = arith.constant 176 : index
    %c0_198 = arith.constant 0 : index
    %144 = tpu.strided_load %arg1[%c0_197, %c176, %c0_198] {strides = array<i32: 1, 2, 1>} : memref<1x256x4xf32, #tpu.memory_space<vmem>>, vector<1x7x4xf32>
    %145 = vector.shape_cast %144 : vector<1x7x4xf32> to vector<7x4xf32>
    %c35_199 = arith.constant 35 : index
    %c12_200 = arith.constant 12 : index
    %146 = vector.load %arg11[%c35_199, %c12_200] : memref<49x36xf32, #tpu.memory_space<vmem>>, vector<7x4xf32>
    tpu.vector_store %arg11[%c35_199, %c12_200], %145 {strides = array<i32>} : memref<49x36xf32, #tpu.memory_space<vmem>>, vector<7x4xf32>,
    %c0_201 = arith.constant 0 : index
    %c177 = arith.constant 177 : index
    %c0_202 = arith.constant 0 : index
    %147 = tpu.strided_load %arg1[%c0_201, %c177, %c0_202] {strides = array<i32: 1, 2, 1>} : memref<1x256x4xf32, #tpu.memory_space<vmem>>, vector<1x7x4xf32>
    %148 = vector.shape_cast %147 : vector<1x7x4xf32> to vector<7x4xf32>
    %c35_203 = arith.constant 35 : index
    %c16_204 = arith.constant 16 : index
    %149 = vector.load %arg11[%c35_203, %c16_204] : memref<49x36xf32, #tpu.memory_space<vmem>>, vector<7x4xf32>
    tpu.vector_store %arg11[%c35_203, %c16_204], %148 {strides = array<i32>} : memref<49x36xf32, #tpu.memory_space<vmem>>, vector<7x4xf32>,
    %c0_205 = arith.constant 0 : index
    %c178 = arith.constant 178 : index
    %c0_206 = arith.constant 0 : index
    %150 = tpu.strided_load %arg1[%c0_205, %c178, %c0_206] {strides = array<i32: 1, 2, 1>} : memref<1x256x4xf32, #tpu.memory_space<vmem>>, vector<1x7x4xf32>
    %151 = vector.shape_cast %150 : vector<1x7x4xf32> to vector<7x4xf32>
    %c35_207 = arith.constant 35 : index
    %c20_208 = arith.constant 20 : index
    %152 = vector.load %arg11[%c35_207, %c20_208] : memref<49x36xf32, #tpu.memory_space<vmem>>, vector<7x4xf32>
    tpu.vector_store %arg11[%c35_207, %c20_208], %151 {strides = array<i32>} : memref<49x36xf32, #tpu.memory_space<vmem>>, vector<7x4xf32>,
    %c0_209 = arith.constant 0 : index
    %c192 = arith.constant 192 : index
    %c0_210 = arith.constant 0 : index
    %153 = tpu.strided_load %arg1[%c0_209, %c192, %c0_210] {strides = array<i32: 1, 2, 1>} : memref<1x256x4xf32, #tpu.memory_space<vmem>>, vector<1x7x4xf32>
    %154 = vector.shape_cast %153 : vector<1x7x4xf32> to vector<7x4xf32>
    %c35_211 = arith.constant 35 : index
    %c24_212 = arith.constant 24 : index
    %155 = vector.load %arg11[%c35_211, %c24_212] : memref<49x36xf32, #tpu.memory_space<vmem>>, vector<7x4xf32>
    tpu.vector_store %arg11[%c35_211, %c24_212], %154 {strides = array<i32>} : memref<49x36xf32, #tpu.memory_space<vmem>>, vector<7x4xf32>,
    %c0_213 = arith.constant 0 : index
    %c193 = arith.constant 193 : index
    %c0_214 = arith.constant 0 : index
    %156 = tpu.strided_load %arg1[%c0_213, %c193, %c0_214] {strides = array<i32: 1, 2, 1>} : memref<1x256x4xf32, #tpu.memory_space<vmem>>, vector<1x7x4xf32>
    %157 = vector.shape_cast %156 : vector<1x7x4xf32> to vector<7x4xf32>
    %c35_215 = arith.constant 35 : index
    %c28_216 = arith.constant 28 : index
    %158 = vector.load %arg11[%c35_215, %c28_216] : memref<49x36xf32, #tpu.memory_space<vmem>>, vector<7x4xf32>
    tpu.vector_store %arg11[%c35_215, %c28_216], %157 {strides = array<i32>} : memref<49x36xf32, #tpu.memory_space<vmem>>, vector<7x4xf32>,
    %c0_217 = arith.constant 0 : index
    %c194 = arith.constant 194 : index
    %c0_218 = arith.constant 0 : index
    %159 = tpu.strided_load %arg1[%c0_217, %c194, %c0_218] {strides = array<i32: 1, 2, 1>} : memref<1x256x4xf32, #tpu.memory_space<vmem>>, vector<1x7x4xf32>
    %160 = vector.shape_cast %159 : vector<1x7x4xf32> to vector<7x4xf32>
    %c35_219 = arith.constant 35 : index
    %c32_220 = arith.constant 32 : index
    %161 = vector.load %arg11[%c35_219, %c32_220] : memref<49x36xf32, #tpu.memory_space<vmem>>, vector<7x4xf32>
    tpu.vector_store %arg11[%c35_219, %c32_220], %160 {strides = array<i32>} : memref<49x36xf32, #tpu.memory_space<vmem>>, vector<7x4xf32>,
    %c0_221 = arith.constant 0 : index
    %c192_222 = arith.constant 192 : index
    %c0_223 = arith.constant 0 : index
    %162 = tpu.strided_load %arg1[%c0_221, %c192_222, %c0_223] {strides = array<i32: 1, 2, 1>} : memref<1x256x4xf32, #tpu.memory_space<vmem>>, vector<1x7x4xf32>
    %163 = vector.shape_cast %162 : vector<1x7x4xf32> to vector<7x4xf32>
    %c42 = arith.constant 42 : index
    %c0_224 = arith.constant 0 : index
    %164 = vector.load %arg11[%c42, %c0_224] : memref<49x36xf32, #tpu.memory_space<vmem>>, vector<7x4xf32>
    tpu.vector_store %arg11[%c42, %c0_224], %163 {strides = array<i32>} : memref<49x36xf32, #tpu.memory_space<vmem>>, vector<7x4xf32>,
    %c0_225 = arith.constant 0 : index
    %c193_226 = arith.constant 193 : index
    %c0_227 = arith.constant 0 : index
    %165 = tpu.strided_load %arg1[%c0_225, %c193_226, %c0_227] {strides = array<i32: 1, 2, 1>} : memref<1x256x4xf32, #tpu.memory_space<vmem>>, vector<1x7x4xf32>
    %166 = vector.shape_cast %165 : vector<1x7x4xf32> to vector<7x4xf32>
    %c42_228 = arith.constant 42 : index
    %c4_229 = arith.constant 4 : index
    %167 = vector.load %arg11[%c42_228, %c4_229] : memref<49x36xf32, #tpu.memory_space<vmem>>, vector<7x4xf32>
    tpu.vector_store %arg11[%c42_228, %c4_229], %166 {strides = array<i32>} : memref<49x36xf32, #tpu.memory_space<vmem>>, vector<7x4xf32>,
    %c0_230 = arith.constant 0 : index
    %c194_231 = arith.constant 194 : index
    %c0_232 = arith.constant 0 : index
    %168 = tpu.strided_load %arg1[%c0_230, %c194_231, %c0_232] {strides = array<i32: 1, 2, 1>} : memref<1x256x4xf32, #tpu.memory_space<vmem>>, vector<1x7x4xf32>
    %169 = vector.shape_cast %168 : vector<1x7x4xf32> to vector<7x4xf32>
    %c42_233 = arith.constant 42 : index
    %c8_234 = arith.constant 8 : index
    %170 = vector.load %arg11[%c42_233, %c8_234] : memref<49x36xf32, #tpu.memory_space<vmem>>, vector<7x4xf32>
    tpu.vector_store %arg11[%c42_233, %c8_234], %169 {strides = array<i32>} : memref<49x36xf32, #tpu.memory_space<vmem>>, vector<7x4xf32>,
    %c0_235 = arith.constant 0 : index
    %c208 = arith.constant 208 : index
    %c0_236 = arith.constant 0 : index
    %171 = tpu.strided_load %arg1[%c0_235, %c208, %c0_236] {strides = array<i32: 1, 2, 1>} : memref<1x256x4xf32, #tpu.memory_space<vmem>>, vector<1x7x4xf32>
    %172 = vector.shape_cast %171 : vector<1x7x4xf32> to vector<7x4xf32>
    %c42_237 = arith.constant 42 : index
    %c12_238 = arith.constant 12 : index
    %173 = vector.load %arg11[%c42_237, %c12_238] : memref<49x36xf32, #tpu.memory_space<vmem>>, vector<7x4xf32>
    tpu.vector_store %arg11[%c42_237, %c12_238], %172 {strides = array<i32>} : memref<49x36xf32, #tpu.memory_space<vmem>>, vector<7x4xf32>,
    %c0_239 = arith.constant 0 : index
    %c209 = arith.constant 209 : index
    %c0_240 = arith.constant 0 : index
    %174 = tpu.strided_load %arg1[%c0_239, %c209, %c0_240] {strides = array<i32: 1, 2, 1>} : memref<1x256x4xf32, #tpu.memory_space<vmem>>, vector<1x7x4xf32>
    %175 = vector.shape_cast %174 : vector<1x7x4xf32> to vector<7x4xf32>
    %c42_241 = arith.constant 42 : index
    %c16_242 = arith.constant 16 : index
    %176 = vector.load %arg11[%c42_241, %c16_242] : memref<49x36xf32, #tpu.memory_space<vmem>>, vector<7x4xf32>
    tpu.vector_store %arg11[%c42_241, %c16_242], %175 {strides = array<i32>} : memref<49x36xf32, #tpu.memory_space<vmem>>, vector<7x4xf32>,
    %c0_243 = arith.constant 0 : index
    %c210 = arith.constant 210 : index
    %c0_244 = arith.constant 0 : index
    %177 = tpu.strided_load %arg1[%c0_243, %c210, %c0_244] {strides = array<i32: 1, 2, 1>} : memref<1x256x4xf32, #tpu.memory_space<vmem>>, vector<1x7x4xf32>
    %178 = vector.shape_cast %177 : vector<1x7x4xf32> to vector<7x4xf32>
    %c42_245 = arith.constant 42 : index
    %c20_246 = arith.constant 20 : index
    %179 = vector.load %arg11[%c42_245, %c20_246] : memref<49x36xf32, #tpu.memory_space<vmem>>, vector<7x4xf32>
    tpu.vector_store %arg11[%c42_245, %c20_246], %178 {strides = array<i32>} : memref<49x36xf32, #tpu.memory_space<vmem>>, vector<7x4xf32>,
    %c0_247 = arith.constant 0 : index
    %c224 = arith.constant 224 : index
    %c0_248 = arith.constant 0 : index
    %180 = tpu.strided_load %arg1[%c0_247, %c224, %c0_248] {strides = array<i32: 1, 2, 1>} : memref<1x256x4xf32, #tpu.memory_space<vmem>>, vector<1x7x4xf32>
    %181 = vector.shape_cast %180 : vector<1x7x4xf32> to vector<7x4xf32>
    %c42_249 = arith.constant 42 : index
    %c24_250 = arith.constant 24 : index
    %182 = vector.load %arg11[%c42_249, %c24_250] : memref<49x36xf32, #tpu.memory_space<vmem>>, vector<7x4xf32>
    tpu.vector_store %arg11[%c42_249, %c24_250], %181 {strides = array<i32>} : memref<49x36xf32, #tpu.memory_space<vmem>>, vector<7x4xf32>,
    %c0_251 = arith.constant 0 : index
    %c225 = arith.constant 225 : index
    %c0_252 = arith.constant 0 : index
    %183 = tpu.strided_load %arg1[%c0_251, %c225, %c0_252] {strides = array<i32: 1, 2, 1>} : memref<1x256x4xf32, #tpu.memory_space<vmem>>, vector<1x7x4xf32>
    %184 = vector.shape_cast %183 : vector<1x7x4xf32> to vector<7x4xf32>
    %c42_253 = arith.constant 42 : index
    %c28_254 = arith.constant 28 : index
    %185 = vector.load %arg11[%c42_253, %c28_254] : memref<49x36xf32, #tpu.memory_space<vmem>>, vector<7x4xf32>
    tpu.vector_store %arg11[%c42_253, %c28_254], %184 {strides = array<i32>} : memref<49x36xf32, #tpu.memory_space<vmem>>, vector<7x4xf32>,
    %c0_255 = arith.constant 0 : index
    %c226 = arith.constant 226 : index
    %c0_256 = arith.constant 0 : index
    %186 = tpu.strided_load %arg1[%c0_255, %c226, %c0_256] {strides = array<i32: 1, 2, 1>} : memref<1x256x4xf32, #tpu.memory_space<vmem>>, vector<1x7x4xf32>
    %187 = vector.shape_cast %186 : vector<1x7x4xf32> to vector<7x4xf32>
    %c42_257 = arith.constant 42 : index
    %c32_258 = arith.constant 32 : index
    %188 = vector.load %arg11[%c42_257, %c32_258] : memref<49x36xf32, #tpu.memory_space<vmem>>, vector<7x4xf32>
    tpu.vector_store %arg11[%c42_257, %c32_258], %187 {strides = array<i32>} : memref<49x36xf32, #tpu.memory_space<vmem>>, vector<7x4xf32>,
    %c0_259 = arith.constant 0 : index
    %c0_260 = arith.constant 0 : index
    %189 = vector.load %arg11[%c0_259, %c0_260] : memref<49x36xf32, #tpu.memory_space<vmem>>, vector<49x36xf32>
    %c0_261 = arith.constant 0 : index
    %c0_262 = arith.constant 0 : index
    %190 = vector.load %arg2[%c0_261, %c0_262] : memref<36x16xf32, #tpu.memory_space<vmem>>, vector<36x16xf32>
    %cst = arith.constant dense<0.000000e+00> : vector<49x16xf32>
    %191 = tpu.matmul %189, %190, %cst {dimension_numbers = #tpu.dot_dimension_numbers<[1], [0], [0], [1], [0, 0, 1, 1], [], []>} : vector<49x36xf32>, vector<36x16xf32>, vector<49x16xf32> -> vector<49x16xf32>
    %c0_263 = arith.constant 0 : index
    %c0_264 = arith.constant 0 : index
    %192 = vector.load %arg3[%c0_263, %c0_264] : memref<1x16xf32, #tpu.memory_space<vmem>>, vector<1x16xf32>
    %193 = vector.broadcast %192 : vector<1x16xf32> to vector<49x16xf32>
    %194 = arith.addf %191, %193 : vector<49x16xf32>
    %cst_265 = arith.constant 0.000000e+00 : f32
    %195 = vector.broadcast %cst_265 : f32 to vector<49x16xf32>
    %196 = arith.maximumf %194, %195 : vector<49x16xf32>
    %c0_266 = arith.constant 0 : index
    %c0_267 = arith.constant 0 : index
    %197 = vector.load %arg12[%c0_266, %c0_267] : memref<49x16xf32, #tpu.memory_space<vmem>>, vector<49x16xf32>
    tpu.vector_store %arg12[%c0_266, %c0_267], %196 {strides = array<i32>} : memref<49x16xf32, #tpu.memory_space<vmem>>, vector<49x16xf32>,
    %c0_268 = arith.constant 0 : index
    %c0_269 = arith.constant 0 : index
    %198 = tpu.strided_load %arg12[%c0_268, %c0_269] {strides = array<i32: 2, 1>} : memref<49x16xf32, #tpu.memory_space<vmem>>, vector<3x16xf32>
    %c0_270 = arith.constant 0 : index
    %c0_271 = arith.constant 0 : index
    %199 = vector.load %arg13[%c0_270, %c0_271] : memref<9x144xf32, #tpu.memory_space<vmem>>, vector<3x16xf32>
    tpu.vector_store %arg13[%c0_270, %c0_271], %198 {strides = array<i32>} : memref<9x144xf32, #tpu.memory_space<vmem>>, vector<3x16xf32>,
    %c1_272 = arith.constant 1 : index
    %c0_273 = arith.constant 0 : index
    %200 = tpu.strided_load %arg12[%c1_272, %c0_273] {strides = array<i32: 2, 1>} : memref<49x16xf32, #tpu.memory_space<vmem>>, vector<3x16xf32>
    %c0_274 = arith.constant 0 : index
    %c16_275 = arith.constant 16 : index
    %201 = vector.load %arg13[%c0_274, %c16_275] : memref<9x144xf32, #tpu.memory_space<vmem>>, vector<3x16xf32>
    tpu.vector_store %arg13[%c0_274, %c16_275], %200 {strides = array<i32>} : memref<9x144xf32, #tpu.memory_space<vmem>>, vector<3x16xf32>,
    %c2_276 = arith.constant 2 : index
    %c0_277 = arith.constant 0 : index
    %202 = tpu.strided_load %arg12[%c2_276, %c0_277] {strides = array<i32: 2, 1>} : memref<49x16xf32, #tpu.memory_space<vmem>>, vector<3x16xf32>
    %c0_278 = arith.constant 0 : index
    %c32_279 = arith.constant 32 : index
    %203 = vector.load %arg13[%c0_278, %c32_279] : memref<9x144xf32, #tpu.memory_space<vmem>>, vector<3x16xf32>
    tpu.vector_store %arg13[%c0_278, %c32_279], %202 {strides = array<i32>} : memref<9x144xf32, #tpu.memory_space<vmem>>, vector<3x16xf32>,
    %c7_280 = arith.constant 7 : index
    %c0_281 = arith.constant 0 : index
    %204 = tpu.strided_load %arg12[%c7_280, %c0_281] {strides = array<i32: 2, 1>} : memref<49x16xf32, #tpu.memory_space<vmem>>, vector<3x16xf32>
    %c0_282 = arith.constant 0 : index
    %c48_283 = arith.constant 48 : index
    %205 = vector.load %arg13[%c0_282, %c48_283] : memref<9x144xf32, #tpu.memory_space<vmem>>, vector<3x16xf32>
    tpu.vector_store %arg13[%c0_282, %c48_283], %204 {strides = array<i32>} : memref<9x144xf32, #tpu.memory_space<vmem>>, vector<3x16xf32>,
    %c8_284 = arith.constant 8 : index
    %c0_285 = arith.constant 0 : index
    %206 = tpu.strided_load %arg12[%c8_284, %c0_285] {strides = array<i32: 2, 1>} : memref<49x16xf32, #tpu.memory_space<vmem>>, vector<3x16xf32>
    %c0_286 = arith.constant 0 : index
    %c64_287 = arith.constant 64 : index
    %207 = vector.load %arg13[%c0_286, %c64_287] : memref<9x144xf32, #tpu.memory_space<vmem>>, vector<3x16xf32>
    tpu.vector_store %arg13[%c0_286, %c64_287], %206 {strides = array<i32>} : memref<9x144xf32, #tpu.memory_space<vmem>>, vector<3x16xf32>,
    %c9 = arith.constant 9 : index
    %c0_288 = arith.constant 0 : index
    %208 = tpu.strided_load %arg12[%c9, %c0_288] {strides = array<i32: 2, 1>} : memref<49x16xf32, #tpu.memory_space<vmem>>, vector<3x16xf32>
    %c0_289 = arith.constant 0 : index
    %c80_290 = arith.constant 80 : index
    %209 = vector.load %arg13[%c0_289, %c80_290] : memref<9x144xf32, #tpu.memory_space<vmem>>, vector<3x16xf32>
    tpu.vector_store %arg13[%c0_289, %c80_290], %208 {strides = array<i32>} : memref<9x144xf32, #tpu.memory_space<vmem>>, vector<3x16xf32>,
    %c14_291 = arith.constant 14 : index
    %c0_292 = arith.constant 0 : index
    %210 = tpu.strided_load %arg12[%c14_291, %c0_292] {strides = array<i32: 2, 1>} : memref<49x16xf32, #tpu.memory_space<vmem>>, vector<3x16xf32>
    %c0_293 = arith.constant 0 : index
    %c96_294 = arith.constant 96 : index
    %211 = vector.load %arg13[%c0_293, %c96_294] : memref<9x144xf32, #tpu.memory_space<vmem>>, vector<3x16xf32>
    tpu.vector_store %arg13[%c0_293, %c96_294], %210 {strides = array<i32>} : memref<9x144xf32, #tpu.memory_space<vmem>>, vector<3x16xf32>,
    %c15 = arith.constant 15 : index
    %c0_295 = arith.constant 0 : index
    %212 = tpu.strided_load %arg12[%c15, %c0_295] {strides = array<i32: 2, 1>} : memref<49x16xf32, #tpu.memory_space<vmem>>, vector<3x16xf32>
    %c0_296 = arith.constant 0 : index
    %c112_297 = arith.constant 112 : index
    %213 = vector.load %arg13[%c0_296, %c112_297] : memref<9x144xf32, #tpu.memory_space<vmem>>, vector<3x16xf32>
    tpu.vector_store %arg13[%c0_296, %c112_297], %212 {strides = array<i32>} : memref<9x144xf32, #tpu.memory_space<vmem>>, vector<3x16xf32>,
    %c16_298 = arith.constant 16 : index
    %c0_299 = arith.constant 0 : index
    %214 = tpu.strided_load %arg12[%c16_298, %c0_299] {strides = array<i32: 2, 1>} : memref<49x16xf32, #tpu.memory_space<vmem>>, vector<3x16xf32>
    %c0_300 = arith.constant 0 : index
    %c128_301 = arith.constant 128 : index
    %215 = vector.load %arg13[%c0_300, %c128_301] : memref<9x144xf32, #tpu.memory_space<vmem>>, vector<3x16xf32>
    tpu.vector_store %arg13[%c0_300, %c128_301], %214 {strides = array<i32>} : memref<9x144xf32, #tpu.memory_space<vmem>>, vector<3x16xf32>,
    %c14_302 = arith.constant 14 : index
    %c0_303 = arith.constant 0 : index
    %216 = tpu.strided_load %arg12[%c14_302, %c0_303] {strides = array<i32: 2, 1>} : memref<49x16xf32, #tpu.memory_space<vmem>>, vector<3x16xf32>
    %c3 = arith.constant 3 : index
    %c0_304 = arith.constant 0 : index
    %217 = vector.load %arg13[%c3, %c0_304] : memref<9x144xf32, #tpu.memory_space<vmem>>, vector<3x16xf32>
    tpu.vector_store %arg13[%c3, %c0_304], %216 {strides = array<i32>} : memref<9x144xf32, #tpu.memory_space<vmem>>, vector<3x16xf32>,
    %c15_305 = arith.constant 15 : index
    %c0_306 = arith.constant 0 : index
    %218 = tpu.strided_load %arg12[%c15_305, %c0_306] {strides = array<i32: 2, 1>} : memref<49x16xf32, #tpu.memory_space<vmem>>, vector<3x16xf32>
    %c3_307 = arith.constant 3 : index
    %c16_308 = arith.constant 16 : index
    %219 = vector.load %arg13[%c3_307, %c16_308] : memref<9x144xf32, #tpu.memory_space<vmem>>, vector<3x16xf32>
    tpu.vector_store %arg13[%c3_307, %c16_308], %218 {strides = array<i32>} : memref<9x144xf32, #tpu.memory_space<vmem>>, vector<3x16xf32>,
    %c16_309 = arith.constant 16 : index
    %c0_310 = arith.constant 0 : index
    %220 = tpu.strided_load %arg12[%c16_309, %c0_310] {strides = array<i32: 2, 1>} : memref<49x16xf32, #tpu.memory_space<vmem>>, vector<3x16xf32>
    %c3_311 = arith.constant 3 : index
    %c32_312 = arith.constant 32 : index
    %221 = vector.load %arg13[%c3_311, %c32_312] : memref<9x144xf32, #tpu.memory_space<vmem>>, vector<3x16xf32>
    tpu.vector_store %arg13[%c3_311, %c32_312], %220 {strides = array<i32>} : memref<9x144xf32, #tpu.memory_space<vmem>>, vector<3x16xf32>,
    %c21_313 = arith.constant 21 : index
    %c0_314 = arith.constant 0 : index
    %222 = tpu.strided_load %arg12[%c21_313, %c0_314] {strides = array<i32: 2, 1>} : memref<49x16xf32, #tpu.memory_space<vmem>>, vector<3x16xf32>
    %c3_315 = arith.constant 3 : index
    %c48_316 = arith.constant 48 : index
    %223 = vector.load %arg13[%c3_315, %c48_316] : memref<9x144xf32, #tpu.memory_space<vmem>>, vector<3x16xf32>
    tpu.vector_store %arg13[%c3_315, %c48_316], %222 {strides = array<i32>} : memref<9x144xf32, #tpu.memory_space<vmem>>, vector<3x16xf32>,
    %c22 = arith.constant 22 : index
    %c0_317 = arith.constant 0 : index
    %224 = tpu.strided_load %arg12[%c22, %c0_317] {strides = array<i32: 2, 1>} : memref<49x16xf32, #tpu.memory_space<vmem>>, vector<3x16xf32>
    %c3_318 = arith.constant 3 : index
    %c64_319 = arith.constant 64 : index
    %225 = vector.load %arg13[%c3_318, %c64_319] : memref<9x144xf32, #tpu.memory_space<vmem>>, vector<3x16xf32>
    tpu.vector_store %arg13[%c3_318, %c64_319], %224 {strides = array<i32>} : memref<9x144xf32, #tpu.memory_space<vmem>>, vector<3x16xf32>,
    %c23 = arith.constant 23 : index
    %c0_320 = arith.constant 0 : index
    %226 = tpu.strided_load %arg12[%c23, %c0_320] {strides = array<i32: 2, 1>} : memref<49x16xf32, #tpu.memory_space<vmem>>, vector<3x16xf32>
    %c3_321 = arith.constant 3 : index
    %c80_322 = arith.constant 80 : index
    %227 = vector.load %arg13[%c3_321, %c80_322] : memref<9x144xf32, #tpu.memory_space<vmem>>, vector<3x16xf32>
    tpu.vector_store %arg13[%c3_321, %c80_322], %226 {strides = array<i32>} : memref<9x144xf32, #tpu.memory_space<vmem>>, vector<3x16xf32>,
    %c28_323 = arith.constant 28 : index
    %c0_324 = arith.constant 0 : index
    %228 = tpu.strided_load %arg12[%c28_323, %c0_324] {strides = array<i32: 2, 1>} : memref<49x16xf32, #tpu.memory_space<vmem>>, vector<3x16xf32>
    %c3_325 = arith.constant 3 : index
    %c96_326 = arith.constant 96 : index
    %229 = vector.load %arg13[%c3_325, %c96_326] : memref<9x144xf32, #tpu.memory_space<vmem>>, vector<3x16xf32>
    tpu.vector_store %arg13[%c3_325, %c96_326], %228 {strides = array<i32>} : memref<9x144xf32, #tpu.memory_space<vmem>>, vector<3x16xf32>,
    %c29 = arith.constant 29 : index
    %c0_327 = arith.constant 0 : index
    %230 = tpu.strided_load %arg12[%c29, %c0_327] {strides = array<i32: 2, 1>} : memref<49x16xf32, #tpu.memory_space<vmem>>, vector<3x16xf32>
    %c3_328 = arith.constant 3 : index
    %c112_329 = arith.constant 112 : index
    %231 = vector.load %arg13[%c3_328, %c112_329] : memref<9x144xf32, #tpu.memory_space<vmem>>, vector<3x16xf32>
    tpu.vector_store %arg13[%c3_328, %c112_329], %230 {strides = array<i32>} : memref<9x144xf32, #tpu.memory_space<vmem>>, vector<3x16xf32>,
    %c30 = arith.constant 30 : index
    %c0_330 = arith.constant 0 : index
    %232 = tpu.strided_load %arg12[%c30, %c0_330] {strides = array<i32: 2, 1>} : memref<49x16xf32, #tpu.memory_space<vmem>>, vector<3x16xf32>
    %c3_331 = arith.constant 3 : index
    %c128_332 = arith.constant 128 : index
    %233 = vector.load %arg13[%c3_331, %c128_332] : memref<9x144xf32, #tpu.memory_space<vmem>>, vector<3x16xf32>
    tpu.vector_store %arg13[%c3_331, %c128_332], %232 {strides = array<i32>} : memref<9x144xf32, #tpu.memory_space<vmem>>, vector<3x16xf32>,
    %c28_333 = arith.constant 28 : index
    %c0_334 = arith.constant 0 : index
    %234 = tpu.strided_load %arg12[%c28_333, %c0_334] {strides = array<i32: 2, 1>} : memref<49x16xf32, #tpu.memory_space<vmem>>, vector<3x16xf32>
    %c6 = arith.constant 6 : index
    %c0_335 = arith.constant 0 : index
    %235 = vector.load %arg13[%c6, %c0_335] : memref<9x144xf32, #tpu.memory_space<vmem>>, vector<3x16xf32>
    tpu.vector_store %arg13[%c6, %c0_335], %234 {strides = array<i32>} : memref<9x144xf32, #tpu.memory_space<vmem>>, vector<3x16xf32>,
    %c29_336 = arith.constant 29 : index
    %c0_337 = arith.constant 0 : index
    %236 = tpu.strided_load %arg12[%c29_336, %c0_337] {strides = array<i32: 2, 1>} : memref<49x16xf32, #tpu.memory_space<vmem>>, vector<3x16xf32>
    %c6_338 = arith.constant 6 : index
    %c16_339 = arith.constant 16 : index
    %237 = vector.load %arg13[%c6_338, %c16_339] : memref<9x144xf32, #tpu.memory_space<vmem>>, vector<3x16xf32>
    tpu.vector_store %arg13[%c6_338, %c16_339], %236 {strides = array<i32>} : memref<9x144xf32, #tpu.memory_space<vmem>>, vector<3x16xf32>,
    %c30_340 = arith.constant 30 : index
    %c0_341 = arith.constant 0 : index
    %238 = tpu.strided_load %arg12[%c30_340, %c0_341] {strides = array<i32: 2, 1>} : memref<49x16xf32, #tpu.memory_space<vmem>>, vector<3x16xf32>
    %c6_342 = arith.constant 6 : index
    %c32_343 = arith.constant 32 : index
    %239 = vector.load %arg13[%c6_342, %c32_343] : memref<9x144xf32, #tpu.memory_space<vmem>>, vector<3x16xf32>
    tpu.vector_store %arg13[%c6_342, %c32_343], %238 {strides = array<i32>} : memref<9x144xf32, #tpu.memory_space<vmem>>, vector<3x16xf32>,
    %c35_344 = arith.constant 35 : index
    %c0_345 = arith.constant 0 : index
    %240 = tpu.strided_load %arg12[%c35_344, %c0_345] {strides = array<i32: 2, 1>} : memref<49x16xf32, #tpu.memory_space<vmem>>, vector<3x16xf32>
    %c6_346 = arith.constant 6 : index
    %c48_347 = arith.constant 48 : index
    %241 = vector.load %arg13[%c6_346, %c48_347] : memref<9x144xf32, #tpu.memory_space<vmem>>, vector<3x16xf32>
    tpu.vector_store %arg13[%c6_346, %c48_347], %240 {strides = array<i32>} : memref<9x144xf32, #tpu.memory_space<vmem>>, vector<3x16xf32>,
    %c36 = arith.constant 36 : index
    %c0_348 = arith.constant 0 : index
    %242 = tpu.strided_load %arg12[%c36, %c0_348] {strides = array<i32: 2, 1>} : memref<49x16xf32, #tpu.memory_space<vmem>>, vector<3x16xf32>
    %c6_349 = arith.constant 6 : index
    %c64_350 = arith.constant 64 : index
    %243 = vector.load %arg13[%c6_349, %c64_350] : memref<9x144xf32, #tpu.memory_space<vmem>>, vector<3x16xf32>
    tpu.vector_store %arg13[%c6_349, %c64_350], %242 {strides = array<i32>} : memref<9x144xf32, #tpu.memory_space<vmem>>, vector<3x16xf32>,
    %c37 = arith.constant 37 : index
    %c0_351 = arith.constant 0 : index
    %244 = tpu.strided_load %arg12[%c37, %c0_351] {strides = array<i32: 2, 1>} : memref<49x16xf32, #tpu.memory_space<vmem>>, vector<3x16xf32>
    %c6_352 = arith.constant 6 : index
    %c80_353 = arith.constant 80 : index
    %245 = vector.load %arg13[%c6_352, %c80_353] : memref<9x144xf32, #tpu.memory_space<vmem>>, vector<3x16xf32>
    tpu.vector_store %arg13[%c6_352, %c80_353], %244 {strides = array<i32>} : memref<9x144xf32, #tpu.memory_space<vmem>>, vector<3x16xf32>,
    %c42_354 = arith.constant 42 : index
    %c0_355 = arith.constant 0 : index
    %246 = tpu.strided_load %arg12[%c42_354, %c0_355] {strides = array<i32: 2, 1>} : memref<49x16xf32, #tpu.memory_space<vmem>>, vector<3x16xf32>
    %c6_356 = arith.constant 6 : index
    %c96_357 = arith.constant 96 : index
    %247 = vector.load %arg13[%c6_356, %c96_357] : memref<9x144xf32, #tpu.memory_space<vmem>>, vector<3x16xf32>
    tpu.vector_store %arg13[%c6_356, %c96_357], %246 {strides = array<i32>} : memref<9x144xf32, #tpu.memory_space<vmem>>, vector<3x16xf32>,
    %c43 = arith.constant 43 : index
    %c0_358 = arith.constant 0 : index
    %248 = tpu.strided_load %arg12[%c43, %c0_358] {strides = array<i32: 2, 1>} : memref<49x16xf32, #tpu.memory_space<vmem>>, vector<3x16xf32>
    %c6_359 = arith.constant 6 : index
    %c112_360 = arith.constant 112 : index
    %249 = vector.load %arg13[%c6_359, %c112_360] : memref<9x144xf32, #tpu.memory_space<vmem>>, vector<3x16xf32>
    tpu.vector_store %arg13[%c6_359, %c112_360], %248 {strides = array<i32>} : memref<9x144xf32, #tpu.memory_space<vmem>>, vector<3x16xf32>,
    %c44 = arith.constant 44 : index
    %c0_361 = arith.constant 0 : index
    %250 = tpu.strided_load %arg12[%c44, %c0_361] {strides = array<i32: 2, 1>} : memref<49x16xf32, #tpu.memory_space<vmem>>, vector<3x16xf32>
    %c6_362 = arith.constant 6 : index
    %c128_363 = arith.constant 128 : index
    %251 = vector.load %arg13[%c6_362, %c128_363] : memref<9x144xf32, #tpu.memory_space<vmem>>, vector<3x16xf32>
    tpu.vector_store %arg13[%c6_362, %c128_363], %250 {strides = array<i32>} : memref<9x144xf32, #tpu.memory_space<vmem>>, vector<3x16xf32>,
    %c0_364 = arith.constant 0 : index
    %c0_365 = arith.constant 0 : index
    %252 = vector.load %arg13[%c0_364, %c0_365] : memref<9x144xf32, #tpu.memory_space<vmem>>, vector<9x144xf32>
    %c0_366 = arith.constant 0 : index
    %c0_367 = arith.constant 0 : index
    %253 = vector.load %arg4[%c0_366, %c0_367] : memref<144x32xf32, #tpu.memory_space<vmem>>, vector<144x32xf32>
    %cst_368 = arith.constant dense<0.000000e+00> : vector<9x32xf32>
    %254 = tpu.matmul %252, %253, %cst_368 {dimension_numbers = #tpu.dot_dimension_numbers<[1], [0], [0], [1], [0, 0, 1, 1], [], []>} : vector<9x144xf32>, vector<144x32xf32>, vector<9x32xf32> -> vector<9x32xf32>
    %c0_369 = arith.constant 0 : index
    %c0_370 = arith.constant 0 : index
    %255 = vector.load %arg5[%c0_369, %c0_370] : memref<1x32xf32, #tpu.memory_space<vmem>>, vector<1x32xf32>
    %256 = vector.broadcast %255 : vector<1x32xf32> to vector<9x32xf32>
    %257 = arith.addf %254, %256 : vector<9x32xf32>
    %cst_371 = arith.constant 0.000000e+00 : f32
    %258 = vector.broadcast %cst_371 : f32 to vector<9x32xf32>
    %259 = arith.maximumf %257, %258 : vector<9x32xf32>
    %260 = vector.extract_strided_slice %259 {offsets = [0, 0], sizes = [1, 32], strides = [1, 1]} : vector<9x32xf32> to vector<1x32xf32>
    %c0_372 = arith.constant 0 : index
    %c0_373 = arith.constant 0 : index
    %261 = vector.load %arg14[%c0_372, %c0_373] : memref<1x288xf32, #tpu.memory_space<vmem>>, vector<1x32xf32>
    tpu.vector_store %arg14[%c0_372, %c0_373], %260 {strides = array<i32>} : memref<1x288xf32, #tpu.memory_space<vmem>>, vector<1x32xf32>,
    %262 = vector.extract_strided_slice %259 {offsets = [1, 0], sizes = [1, 32], strides = [1, 1]} : vector<9x32xf32> to vector<1x32xf32>
    %c0_374 = arith.constant 0 : index
    %c32_375 = arith.constant 32 : index
    %263 = vector.load %arg14[%c0_374, %c32_375] : memref<1x288xf32, #tpu.memory_space<vmem>>, vector<1x32xf32>
    tpu.vector_store %arg14[%c0_374, %c32_375], %262 {strides = array<i32>} : memref<1x288xf32, #tpu.memory_space<vmem>>, vector<1x32xf32>,
    %264 = vector.extract_strided_slice %259 {offsets = [2, 0], sizes = [1, 32], strides = [1, 1]} : vector<9x32xf32> to vector<1x32xf32>
    %c0_376 = arith.constant 0 : index
    %c64_377 = arith.constant 64 : index
    %265 = vector.load %arg14[%c0_376, %c64_377] : memref<1x288xf32, #tpu.memory_space<vmem>>, vector<1x32xf32>
    tpu.vector_store %arg14[%c0_376, %c64_377], %264 {strides = array<i32>} : memref<1x288xf32, #tpu.memory_space<vmem>>, vector<1x32xf32>,
    %266 = vector.extract_strided_slice %259 {offsets = [3, 0], sizes = [1, 32], strides = [1, 1]} : vector<9x32xf32> to vector<1x32xf32>
    %c0_378 = arith.constant 0 : index
    %c96_379 = arith.constant 96 : index
    %267 = vector.load %arg14[%c0_378, %c96_379] : memref<1x288xf32, #tpu.memory_space<vmem>>, vector<1x32xf32>
    tpu.vector_store %arg14[%c0_378, %c96_379], %266 {strides = array<i32>} : memref<1x288xf32, #tpu.memory_space<vmem>>, vector<1x32xf32>,
    %268 = vector.extract_strided_slice %259 {offsets = [4, 0], sizes = [1, 32], strides = [1, 1]} : vector<9x32xf32> to vector<1x32xf32>
    %c0_380 = arith.constant 0 : index
    %c128_381 = arith.constant 128 : index
    %269 = vector.load %arg14[%c0_380, %c128_381] : memref<1x288xf32, #tpu.memory_space<vmem>>, vector<1x32xf32>
    tpu.vector_store %arg14[%c0_380, %c128_381], %268 {strides = array<i32>} : memref<1x288xf32, #tpu.memory_space<vmem>>, vector<1x32xf32>,
    %270 = vector.extract_strided_slice %259 {offsets = [5, 0], sizes = [1, 32], strides = [1, 1]} : vector<9x32xf32> to vector<1x32xf32>
    %c0_382 = arith.constant 0 : index
    %c160_383 = arith.constant 160 : index
    %271 = vector.load %arg14[%c0_382, %c160_383] : memref<1x288xf32, #tpu.memory_space<vmem>>, vector<1x32xf32>
    tpu.vector_store %arg14[%c0_382, %c160_383], %270 {strides = array<i32>} : memref<1x288xf32, #tpu.memory_space<vmem>>, vector<1x32xf32>,
    %272 = vector.extract_strided_slice %259 {offsets = [6, 0], sizes = [1, 32], strides = [1, 1]} : vector<9x32xf32> to vector<1x32xf32>
    %c0_384 = arith.constant 0 : index
    %c192_385 = arith.constant 192 : index
    %273 = vector.load %arg14[%c0_384, %c192_385] : memref<1x288xf32, #tpu.memory_space<vmem>>, vector<1x32xf32>
    tpu.vector_store %arg14[%c0_384, %c192_385], %272 {strides = array<i32>} : memref<1x288xf32, #tpu.memory_space<vmem>>, vector<1x32xf32>,
    %274 = vector.extract_strided_slice %259 {offsets = [7, 0], sizes = [1, 32], strides = [1, 1]} : vector<9x32xf32> to vector<1x32xf32>
    %c0_386 = arith.constant 0 : index
    %c224_387 = arith.constant 224 : index
    %275 = vector.load %arg14[%c0_386, %c224_387] : memref<1x288xf32, #tpu.memory_space<vmem>>, vector<1x32xf32>
    tpu.vector_store %arg14[%c0_386, %c224_387], %274 {strides = array<i32>} : memref<1x288xf32, #tpu.memory_space<vmem>>, vector<1x32xf32>,
    %276 = vector.extract_strided_slice %259 {offsets = [8, 0], sizes = [1, 32], strides = [1, 1]} : vector<9x32xf32> to vector<1x32xf32>
    %c0_388 = arith.constant 0 : index
    %c256 = arith.constant 256 : index
    %277 = vector.load %arg14[%c0_388, %c256] : memref<1x288xf32, #tpu.memory_space<vmem>>, vector<1x32xf32>
    tpu.vector_store %arg14[%c0_388, %c256], %276 {strides = array<i32>} : memref<1x288xf32, #tpu.memory_space<vmem>>, vector<1x32xf32>,
    %c0_389 = arith.constant 0 : index
    %c0_390 = arith.constant 0 : index
    %278 = vector.load %arg14[%c0_389, %c0_390] : memref<1x288xf32, #tpu.memory_space<vmem>>, vector<1x288xf32>
    %c0_391 = arith.constant 0 : index
    %c0_392 = arith.constant 0 : index
    %279 = vector.load %arg6[%c0_391, %c0_392] : memref<288x256xf32, #tpu.memory_space<vmem>>, vector<288x256xf32>
    %cst_393 = arith.constant dense<0.000000e+00> : vector<1x256xf32>
    %280 = tpu.matmul %278, %279, %cst_393 {dimension_numbers = #tpu.dot_dimension_numbers<[1], [0], [0], [1], [0, 0, 1, 1], [], []>} : vector<1x288xf32>, vector<288x256xf32>, vector<1x256xf32> -> vector<1x256xf32>
    %c0_394 = arith.constant 0 : index
    %c0_395 = arith.constant 0 : index
    %281 = vector.load %arg7[%c0_394, %c0_395] : memref<1x256xf32, #tpu.memory_space<vmem>>, vector<1x256xf32>
    %282 = arith.addf %280, %281 : vector<1x256xf32>
    %cst_396 = arith.constant 0.000000e+00 : f32
    %283 = vector.broadcast %cst_396 : f32 to vector<1x256xf32>
    %284 = arith.maximumf %282, %283 : vector<1x256xf32>
    %c0_397 = arith.constant 0 : index
    %c0_398 = arith.constant 0 : index
    %285 = vector.load %arg8[%c0_397, %c0_398] : memref<256x128xf32, #tpu.memory_space<vmem>>, vector<256x128xf32>
    %cst_399 = arith.constant dense<0.000000e+00> : vector<1x128xf32>
    %286 = tpu.matmul %284, %285, %cst_399 {dimension_numbers = #tpu.dot_dimension_numbers<[1], [0], [0], [1], [0, 0, 1, 1], [], []>} : vector<1x256xf32>, vector<256x128xf32>, vector<1x128xf32> -> vector<1x128xf32>
    %c0_400 = arith.constant 0 : index
    %c0_401 = arith.constant 0 : index
    %287 = vector.load %arg9[%c0_400, %c0_401] : memref<1x128xf32, #tpu.memory_space<vmem>>, vector<1x128xf32>
    %288 = arith.addf %286, %287 : vector<1x128xf32>
    %289 = vector.shape_cast %288 : vector<1x128xf32> to vector<1x128xf32>
    %290 = vector.broadcast %289 : vector<1x128xf32> to vector<8x128xf32>
    %c0_402 = arith.constant 0 : index
    %c0_403 = arith.constant 0 : index
    %c0_404 = arith.constant 0 : index
    %291 = vector.load %arg10[%c0_402, %c0_403, %c0_404] : memref<1x8x128xf32, #tpu.memory_space<vmem>>, vector<1x8x128xf32>
    %292 = vector.shape_cast %291 : vector<1x8x128xf32> to vector<8x128xf32>
    %293 = vector.shape_cast %290 : vector<8x128xf32> to vector<1x8x128xf32>
    tpu.vector_store %arg10[%c0_402, %c0_403, %c0_404], %293 {strides = array<i32>} : memref<1x8x128xf32, #tpu.memory_space<vmem>>, vector<1x8x128xf32>,
    return
  }
  func.func @transform_0(%arg0: i32) -> (i32, i32, i32) {
    %c0_i32 = arith.constant 0 : i32
    %c0_i32_0 = arith.constant 0 : i32
    %c0_i32_1 = arith.constant 0 : i32
    return %arg0, %c0_i32, %c0_i32_0 : i32, i32, i32
  }
  func.func @transform_1(%arg0: i32) -> (i32, i32) {
    %c0_i32 = arith.constant 0 : i32
    %c0_i32_0 = arith.constant 0 : i32
    %c0_i32_1 = arith.constant 0 : i32
    return %c0_i32, %c0_i32_0 : i32, i32
  }
  func.func @transform_2(%arg0: i32) -> (i32, i32) {
    %c0_i32 = arith.constant 0 : i32
    %c0_i32_0 = arith.constant 0 : i32
    %c0_i32_1 = arith.constant 0 : i32
    return %c0_i32, %c0_i32_0 : i32, i32
  }
  func.func @transform_3(%arg0: i32) -> (i32, i32) {
    %c0_i32 = arith.constant 0 : i32
    %c0_i32_0 = arith.constant 0 : i32
    %c0_i32_1 = arith.constant 0 : i32
    return %c0_i32, %c0_i32_0 : i32, i32
  }
  func.func @transform_4(%arg0: i32) -> (i32, i32) {
    %c0_i32 = arith.constant 0 : i32
    %c0_i32_0 = arith.constant 0 : i32
    %c0_i32_1 = arith.constant 0 : i32
    return %c0_i32, %c0_i32_0 : i32, i32
  }
  func.func @transform_5(%arg0: i32) -> (i32, i32) {
    %c0_i32 = arith.constant 0 : i32
    %c0_i32_0 = arith.constant 0 : i32
    %c0_i32_1 = arith.constant 0 : i32
    return %c0_i32, %c0_i32_0 : i32, i32
  }
  func.func @transform_6(%arg0: i32) -> (i32, i32) {
    %c0_i32 = arith.constant 0 : i32
    %c0_i32_0 = arith.constant 0 : i32
    %c0_i32_1 = arith.constant 0 : i32
    return %c0_i32, %c0_i32_0 : i32, i32
  }
  func.func @transform_7(%arg0: i32) -> (i32, i32) {
    %c0_i32 = arith.constant 0 : i32
    %c0_i32_0 = arith.constant 0 : i32
    %c0_i32_1 = arith.constant 0 : i32
    return %c0_i32, %c0_i32_0 : i32, i32
  }
  func.func @transform_8(%arg0: i32) -> (i32, i32) {
    %c0_i32 = arith.constant 0 : i32
    %c0_i32_0 = arith.constant 0 : i32
    %c0_i32_1 = arith.constant 0 : i32
    return %c0_i32, %c0_i32_0 : i32, i32
  }
  func.func @transform_9(%arg0: i32) -> (i32, i32, i32) {
    %c0_i32 = arith.constant 0 : i32
    %c0_i32_0 = arith.constant 0 : i32
    %c0_i32_1 = arith.constant 0 : i32
    return %arg0, %c0_i32, %c0_i32_0 : i32, i32, i32
  }
}

</mosaic_0001>

<bundles_post_ra>
// kernel: qnet_forward.1
= control target key start
LH: loop header
LB: loop body
LE: loop exit
PB: predicated region body
PF: predicated region fallthrough
CT: control target
= control target key end

     0   :  { %s1992_s30 = smov 0   ;;  %s2721_s0 = inlined_call_operand.vmem [shape: f32[2,256,4], index: 0, kind: input, shape index: {}]   ;;  %s2722_s1 = inlined_call_operand.vmem [shape: f32[36,16], index: 1, kind: input, shape index: {}]   ;;  %s2723_s2 = inlined_call_operand.vmem [shape: f32[1,16], index: 2, kind: input, shape index: {}]   ;;  %s2724_s3 = inlined_call_operand.vmem [shape: f32[144,32], index: 3, kind: input, shape index: {}]   ;;  %s2725_s4 = inlined_call_operand.vmem [shape: f32[1,32], index: 4, kind: input, shape index: {}]   ;;  %s2726_s5 = inlined_call_operand.vmem [shape: f32[288,256], index: 5, kind: input, shape index: {}]   ;;  %s2727_s6 = inlined_call_operand.vmem [shape: f32[1,256], index: 6, kind: input, shape index: {}]   ;;  %s2728_s7 = inlined_call_operand.vmem [shape: f32[256,128], index: 7, kind: input, shape index: {}]   ;;  %s2729_s8 = inlined_call_operand.vmem [shape: f32[1,128], index: 8, kind: input, shape index: {}]   ;;  %s2730_s9 = inlined_call_operand.vmem [shape: f32[2,8,128], index: 9, kind: output, shape index: {}]  }
   0x1 LB: > { %s1730_s10 = sadd.s32 4294967295, %s1924_s30   ;;  %p1734_p0 = scmp.ge.s32.totalorder %s1924_s30, 1  ;;  %s1924_s30 = sphi %s1992_s30, %s19_s30  }
   0x2   : > { %p287_p1 = scmp.lt.s32.totalorder %s1924_s30, 3 }
   0x4   : > { %p288_p2 = pnand %p1734_p0, %p287_p1 }
   0x5   : > { %p322_p3 = scmp.lt.s32.totalorder (!%p288_p2), %s1730_s10, 1  ;;  %s1926_s15 = smov (!%p288_p2), 4  }
   0x6   : > { %291 = sbr.rel (%p288_p2) target bundleno = 1330 (0x532), region = 56  ;;  %s1927_s16 = smov (!%p288_p2), 8  }
   0x7   : > { %s1928_s17 = smov (!%p288_p2), 12   ;;  %s1929_s18 = smov (!%p288_p2), 16  }
   0x8   : > { %s1930_s19 = smov (!%p288_p2), 20   ;;  %s1931_s20 = smov (!%p288_p2), 24  }
   0x9   : > { %s1932_s21 = smov (!%p288_p2), 28   ;;  %s1935_s26 = smov (!%p288_p2), 32  }
   0xb   : > { %s2734_s10 = smov (!%p322_p3, %s1730_s10), 1  ;;  %vm332_vm0 = vcmask 30720   ;;  %v745_v21 = vld [vmem:[%s2722_s1 + $0x20] sm:$0xf]  ;;  %vm775_vm1 = vcmask 1043456   ;;  %v1933_v22 = vmov 0.0  }
   0xc   : > { %s1815_s11 = sshll.u32 %s2734_s10, 8  ;;  %1863 = vmatprep.subr.mxu0 %v1933_v22  ;;  %1154 = vmatprep.subr.mxu1 %v1933_v22  ;;  %v744_v24 = vld [vmem:[%s2722_s1 + $0x18] sm:$0xff]  ;;  %vm1934_vm2 = vmmov 0   ;;  %v743_v27 = vld [vmem:[%s2722_s1 + $0x10] sm:$0xff]  ;;  %v742_v28 = vld [vmem:[%s2722_s1 + $0x8] sm:$0xff]  ;;  %vm340_vm3 = vcmask 63520  }
   0xd   : > { %s2006_s14 = scalar_lea.vmem %s2721_s0, %s1815_s11  ;;  %1864 = vmatpush3.msk.msra.mxu0 %vm775_vm1, %v745_v21  ;;  %1873 = vmatprep.mubr.msk.f32.mxu0 %vm1934_vm2, %v1933_v22  ;;  %v741_v31 = vld [vmem:[%s2722_s1] sm:$0xff]  ;;  %vm348_vm4 = vcmask 96320   ;;  %vm356_vm5 = vcmask 129120   ;;  %vm364_vm6 = vcmask 161920   ;;  %vm372_vm7 = vcmask 194720   ;;  %s1737_s27 = sshll.u32 %s2734_s10, 3 }
   0xe   : > { %v1738_v0 = vld [vmem:[%s2006_s14 + $0x1] ss:$2 sm:$0x7f]  ;;  %v1739_v1 = vld [vmem:[%s2006_s14 + $0x2] ss:$2 sm:$0x7f]  ;;  %1865 = vmatprep.subr.mxu0 %v1933_v22 }
   0xf   : > { %337 = vrot.lane.b32.xlu0 %v1738_v0, %s1926_s15  ;;  %345 = vrot.lane.b32.xlu1 %v1739_v1, %s1927_s16  ;;  %v1747_v2 = vld [vmem:[%s2006_s14 + $0x21] ss:$2 sm:$0x7f]  ;;  %v1748_v3 = vld [vmem:[%s2006_s14 + $0x22] ss:$2 sm:$0x7f] }
  0x10   : > { %v1740_v4 = vld [vmem:[%s2006_s14 + $0x10] ss:$2 sm:$0x7f]  ;;  %v1741_v6 = vld [vmem:[%s2006_s14 + $0x11] ss:$2 sm:$0x7f]  ;;  %1866 = vmatpush3.msra.mxu0 %v744_v24 }
  0x11   : > { %v1749_v5 = vld [vmem:[%s2006_s14 + $0x30] ss:$2 sm:$0x7f]  ;;  %v1750_v7 = vld [vmem:[%s2006_s14 + $0x31] ss:$2 sm:$0x7f]  ;;  %1867 = vmatprep.subr.mxu0 %v1933_v22 }
  0x12   : > { %v1742_v8 = vld [vmem:[%s2006_s14 + $0x12] ss:$2 sm:$0x7f]  ;;  %v1756_v10 = vld [vmem:[%s2006_s14 + $0x41] ss:$2 sm:$0x7f]  ;;  %1868 = vmatpush3.msra.mxu0 %v743_v27 }
  0x13   : > { %402 = vrot.lane.b32.xlu0 %v1747_v2, %s1926_s15  ;;  %408 = vrot.lane.b32.xlu1 %v1748_v3, %s1927_s16  ;;  %v1751_v9 = vld [vmem:[%s2006_s14 + $0x32] ss:$2 sm:$0x7f]  ;;  %v1743_v11 = vld [vmem:[%s2006_s14 + $0x20] ss:$2 sm:$0x7f] }
  0x14   : > { %v1752_v12 = vld [vmem:[%s2006_s14 + $0x40] ss:$2 sm:$0x7f]  ;;  %v1744_v14 = vld [vmem:[%s2006_s14 + $0x21] ss:$2 sm:$0x7f]  ;;  %1869 = vmatprep.subr.mxu0 %v1933_v22 }
  0x15   : > { %v1757_v13 = vld [vmem:[%s2006_s14 + $0x42] ss:$2 sm:$0x7f]  ;;  %v1753_v15 = vld [vmem:[%s2006_s14 + $0x41] ss:$2 sm:$0x7f]  ;;  %1870 = vmatpush3.msra.mxu0 %v742_v28 }
  0x16   : > { %v1758_v16 = vld [vmem:[%s2006_s14 + $0x50] ss:$2 sm:$0x7f]  ;;  %v1745_v17 = vld [vmem:[%s2006_s14 + $0x22] ss:$2 sm:$0x7f]  ;;  %1871 = vmatprep.subr.mxu0 %v1933_v22 }
  0x17   : > { %353 = vrot.lane.b32.xlu0 %v1740_v4, %s1928_s17  ;;  %415 = vrot.lane.b32.xlu1 %v1749_v5, %s1928_s17  ;;  %v331_v18 = vld [vmem:[%s2006_s14] ss:$2 sm:$0x7f]  ;;  %v1759_v26 = vld [vmem:[%s2006_s14 + $0x51] ss:$2 sm:$0x7f] }
  0x18   : > { %333 = vst.msk [vmem:[#allocation2] sm:$0x7f] %vm332_vm0, %v331_v18  ;;  %v1746_v19 = vld [vmem:[%s2006_s14 + $0x20] ss:$2 sm:$0x7f]  ;;  %1872 = vmatpush3.msra.mxu0 %v741_v31  ;;  %vm380_vm8 = vcmask 227520  }
  0x19   : > { %v1755_v20 = vld [vmem:[%s2006_s14 + $0x40] ss:$2 sm:$0x7f]  ;;  %399 = vst.msk [vmem:[#allocation2 + $0x7] sm:$0x7f] %vm332_vm0, %v1746_v19  ;;  %vm388_vm9 = vcmask 260320  }
  0x1a   : > { %455 = vst.msk [vmem:[#allocation2 + $0xe] sm:$0x7f] %vm332_vm0, %v1755_v20  ;;  %v1764_v23 = vld [vmem:[%s2006_s14 + $0x60] ss:$2 sm:$0x7f]  ;;  %vm396_vm10 = vcmask 293120  }
  0x1b   : > { %361 = vrot.lane.b32.xlu0 %v1741_v6, %s1929_s18  ;;  %422 = vrot.lane.b32.xlu1 %v1750_v7, %s1929_s18  ;;  %511 = vst.msk [vmem:[#allocation2 + $0x15] sm:$0x7f] %vm332_vm0, %v1764_v23  ;;  %v1754_v25 = vld [vmem:[%s2006_s14 + $0x42] ss:$2 sm:$0x7f]  ;;  %vm753_vm11 = vcmask 293888  }
  0x1c   : > { %v1760_v29 = vld [vmem:[%s2006_s14 + $0x52] ss:$2 sm:$0x7f]  ;;  %v1765_v30 = vld [vmem:[%s2006_s14 + $0x61] ss:$2 sm:$0x7f] }
  0x1d   : > { %v1761_v32 = vld [vmem:[%s2006_s14 + $0x60] ss:$2 sm:$0x7f]  ;;  %v1762_v35 = vld [vmem:[%s2006_s14 + $0x61] ss:$2 sm:$0x7f] }
  0x1e   : > { %v1766_v33 = vld [vmem:[%s2006_s14 + $0x62] ss:$2 sm:$0x7f]  ;;  %v1767_v36 = vld [vmem:[%s2006_s14 + $0x70] ss:$2 sm:$0x7f] }
  0x1f   : > { %369 = vrot.lane.b32.xlu0 %v1742_v8, %s1930_s19  ;;  %429 = vrot.lane.b32.xlu1 %v1751_v9, %s1930_s19  ;;  %v1773_v34 = vld [vmem:[%s2006_s14 + $0x80] ss:$2 sm:$0x7f]  ;;  %v1768_v38 = vld [vmem:[%s2006_s14 + $0x71] ss:$2 sm:$0x7f] }
  0x20   : > { %567 = vst.msk [vmem:[#allocation2 + $0x1c] sm:$0x7f] %vm332_vm0, %v1773_v34  ;;  %v1763_v37 = vld [vmem:[%s2006_s14 + $0x62] ss:$2 sm:$0x7f]  ;;  %vm886_vm12 = vcmask 130048  }
  0x21   : > { %v1769_v39 = vld [vmem:[%s2006_s14 + $0x72] ss:$2 sm:$0x7f]  ;;  %v1774_v40 = vld [vmem:[%s2006_s14 + $0x81] ss:$2 sm:$0x7f] }
  0x22   : > { %v1770_v41 = vld [vmem:[%s2006_s14 + $0x80] ss:$2 sm:$0x7f]  ;;  %v1771_v44 = vld [vmem:[%s2006_s14 + $0x81] ss:$2 sm:$0x7f] }
  0x23   : > { %458 = vrot.lane.b32.xlu0 %v1756_v10, %s1926_s15  ;;  %377 = vrot.lane.b32.xlu1 %v1743_v11, %s1931_s20  ;;  %v1775_v42 = vld [vmem:[%s2006_s14 + $0x82] ss:$2 sm:$0x7f]  ;;  %v1776_v45 = vld [vmem:[%s2006_s14 + $0x90] ss:$2 sm:$0x7f] }
  0x24   : > { %v1782_v43 = vld [vmem:[%s2006_s14 + $0xa0] ss:$2 sm:$0x7f]  ;;  %v1777_v47 = vld [vmem:[%s2006_s14 + $0x91] ss:$2 sm:$0x7f] }
  0x25   : > { %623 = vst.msk [vmem:[#allocation2 + $0x23] sm:$0x7f] %vm332_vm0, %v1782_v43  ;;  %v1772_v46 = vld [vmem:[%s2006_s14 + $0x82] ss:$2 sm:$0x7f]  ;;  %vm896_vm13 = vcmask 124928  }
  0x26   : > { %v1778_v48 = vld [vmem:[%s2006_s14 + $0x92] ss:$2 sm:$0x7f]  ;;  %v1783_v49 = vld [vmem:[%s2006_s14 + $0xa1] ss:$2 sm:$0x7f] }
  0x27   : > { %436 = vrot.lane.b32.xlu0 %v1752_v12, %s1931_s20  ;;  %464 = vrot.lane.b32.xlu1 %v1757_v13, %s1927_s16  ;;  %v1779_v50 = vld [vmem:[%s2006_s14 + $0xa0] ss:$2 sm:$0x7f]  ;;  %v1780_v53 = vld [vmem:[%s2006_s14 + $0xa1] ss:$2 sm:$0x7f] }
  0x28   : > { %v1784_v51 = vld [vmem:[%s2006_s14 + $0xa2] ss:$2 sm:$0x7f]  ;;  %v1785_v54 = vld [vmem:[%s2006_s14 + $0xb0] ss:$2 sm:$0x7f] }
  0x29   : > { %v1791_v52 = vld [vmem:[%s2006_s14 + $0xc0] ss:$2 sm:$0x7f]  ;;  %v1786_v56 = vld [vmem:[%s2006_s14 + $0xb1] ss:$2 sm:$0x7f] }
  0x2a   : > { %679 = vst.msk [vmem:[#allocation2 + $0x2a] sm:$0x7f] %vm332_vm0, %v1791_v52  ;;  %v1781_v55 = vld [vmem:[%s2006_s14 + $0xa2] ss:$2 sm:$0x7f]  ;;  %vm961_vm14 = vcmask 128003  }
  0x2b   : > { %385 = vrot.lane.b32.xlu0 %v1744_v14, %s1932_s21  ;;  %443 = vrot.lane.b32.xlu1 %v1753_v15, %s1932_s21  ;;  %v1787_v57 = vld [vmem:[%s2006_s14 + $0xb2] ss:$2 sm:$0x7f]  ;;  %v1792_v58 = vld [vmem:[%s2006_s14 + $0xc1] ss:$2 sm:$0x7f] }
  0x2c   : > { %v1788_v59 = vld [vmem:[%s2006_s14 + $0xc0] ss:$2 sm:$0x7f]  ;;  %v1789_v61 = vld [vmem:[%s2006_s14 + $0xc1] ss:$2 sm:$0x7f] }
  0x2d   : > { %v1793_v60 = vld [vmem:[%s2006_s14 + $0xc2] ss:$2 sm:$0x7f]  ;;  %v1794_v62 = vld [vmem:[%s2006_s14 + $0xd0] ss:$2 sm:$0x7f] }
  0x2e   : > { %v1790_v63 = vld [vmem:[%s2006_s14 + $0xc2] ss:$2 sm:$0x7f]  ;;  %v1795_v0 = vld [vmem:[%s2006_s14 + $0xd1] ss:$2 sm:$0x7f] }
  0x2f   : > { %471 = vrot.lane.b32.xlu0 %v1758_v16, %s1928_s17  ;;  %393 = vrot.lane.b32.xlu1 %v1745_v17, %s1935_s26  ;;  %v1796_v1 = vld [vmem:[%s2006_s14 + $0xd2] ss:$2 sm:$0x7f]  ;;  %v1797_v2 = vld [vmem:[%s2006_s14 + $0xe0] ss:$2 sm:$0x7f] }
  0x30   : > { %v1798_v3 = vld [vmem:[%s2006_s14 + $0xe1] ss:$2 sm:$0x7f]  ;;  %v1799_v4 = vld [vmem:[%s2006_s14 + $0xe2] ss:$2 sm:$0x7f] }
  0x31   : > { %vm893_vm15 = vcmask 122880   ;;  %vm1034_vm0 = vcmask 130054   ;;  %vm904_vm1 = vcmask 256128  }
  0x33   : > { %450 = vrot.lane.b32.xlu0 %v1754_v25, %s1935_s26  ;;  %478 = vrot.lane.b32.xlu1 %v1759_v26, %s1929_s18 }
  0x37   : > { %485 = vrot.lane.b32.xlu0 %v1760_v29, %s1930_s19  ;;  %514 = vrot.lane.b32.xlu1 %v1765_v30, %s1926_s15 }
  0x3b   : > { %492 = vrot.lane.b32.xlu0 %v1761_v32, %s1931_s20  ;;  %520 = vrot.lane.b32.xlu1 %v1766_v33, %s1927_s16 }
  0x3f   : > { %499 = vrot.lane.b32.xlu0 %v1762_v35, %s1932_s21  ;;  %527 = vrot.lane.b32.xlu1 %v1767_v36, %s1928_s17 }
  0x43   : > { %506 = vrot.lane.b32.xlu0 %v1763_v37, %s1935_s26  ;;  %534 = vrot.lane.b32.xlu1 %v1768_v38, %s1929_s18 }
  0x47   : > { %541 = vrot.lane.b32.xlu0 %v1769_v39, %s1930_s19  ;;  %570 = vrot.lane.b32.xlu1 %v1774_v40, %s1926_s15 }
  0x4b   : > { %548 = vrot.lane.b32.xlu0 %v1770_v41, %s1931_s20  ;;  %576 = vrot.lane.b32.xlu1 %v1775_v42, %s1927_s16 }
  0x4f   : > { %555 = vrot.lane.b32.xlu0 %v1771_v44, %s1932_s21  ;;  %583 = vrot.lane.b32.xlu1 %v1776_v45, %s1928_s17 }
  0x53   : > { %562 = vrot.lane.b32.xlu0 %v1772_v46, %s1935_s26  ;;  %590 = vrot.lane.b32.xlu1 %v1777_v47, %s1929_s18 }
  0x57   : > { %597 = vrot.lane.b32.xlu0 %v1778_v48, %s1930_s19  ;;  %626 = vrot.lane.b32.xlu1 %v1783_v49, %s1926_s15 }
  0x5b   : > { %604 = vrot.lane.b32.xlu0 %v1779_v50, %s1931_s20  ;;  %632 = vrot.lane.b32.xlu1 %v1784_v51, %s1927_s16 }
  0x5f   : > { %611 = vrot.lane.b32.xlu0 %v1780_v53, %s1932_s21  ;;  %639 = vrot.lane.b32.xlu1 %v1785_v54, %s1928_s17 }
  0x63   : > { %618 = vrot.lane.b32.xlu0 %v1781_v55, %s1935_s26  ;;  %646 = vrot.lane.b32.xlu1 %v1786_v56, %s1929_s18 }
  0x67   : > { %653 = vrot.lane.b32.xlu0 %v1787_v57, %s1930_s19  ;;  %682 = vrot.lane.b32.xlu1 %v1792_v58, %s1926_s15 }
  0x6b   : > { %660 = vrot.lane.b32.xlu0 %v1788_v59, %s1931_s20  ;;  %688 = vrot.lane.b32.xlu1 %v1793_v60, %s1927_s16  ;;  %s1936_s16 = smov 64  }
  0x6f   : > { %667 = vrot.lane.b32.xlu0 %v1789_v61, %s1932_s21  ;;  %695 = vrot.lane.b32.xlu1 %v1794_v62, %s1928_s17  ;;  %s1937_s17 = smov 48  }
  0x73   : > { %674 = vrot.lane.b32.xlu0 %v1790_v63, %s1935_s26  ;;  %702 = vrot.lane.b32.xlu1 %v1795_v0, %s1929_s18 }
  0x77   : > { %709 = vrot.lane.b32.xlu0 %v1796_v1, %s1930_s19  ;;  %716 = vrot.lane.b32.xlu1 %v1797_v2, %s1931_s20  ;;  %s1938_s19 = smov 80   ;;  %s1939_s20 = smov 112  }
  0x7b   : > { %723 = vrot.lane.b32.xlu0 %v1798_v3, %s1932_s21  ;;  %730 = vrot.lane.b32.xlu1 %v1799_v4, %s1935_s26  ;;  %s1940_s21 = smov 96  }
  0x81   : > { %v338_v5 = vpop.permute.xlu0 %337  ;;  %v346_v6 = vpop.permute.xlu1 %345 }
  0x82   : > { %341 = vst.msk [vmem:[#allocation2] sm:$0x7f] %vm340_vm3, %v338_v5  ;;  %v2235_v5 = vld [vmem:[%s2723_s2] ss:$0 sm:$0xff] }
  0x83   : > { %349 = vst.msk [vmem:[#allocation2] sm:$0x7f] %vm348_vm4, %v346_v6 }
  0x85   : > { %v403_v7 = vpop.permute.xlu0 %402  ;;  %v409_v8 = vpop.permute.xlu1 %408 }
  0x86   : > { %405 = vst.msk [vmem:[#allocation2 + $0x7] sm:$0x7f] %vm340_vm3, %v403_v7 }
  0x87   : > { %411 = vst.msk [vmem:[#allocation2 + $0x7] sm:$0x7f] %vm348_vm4, %v409_v8 }
  0x89   : > { %v354_v9 = vpop.permute.xlu0 %353  ;;  %v416_v10 = vpop.permute.xlu1 %415 }
  0x8a   : > { %357 = vst.msk [vmem:[#allocation2] sm:$0x7f] %vm356_vm5, %v354_v9  ;;  %418 = vst.msk [vmem:[#allocation2 + $0x7] sm:$0x7f] %vm356_vm5, %v416_v10 }
  0x8d   : > { %v362_v11 = vpop.permute.xlu0 %361  ;;  %v423_v12 = vpop.permute.xlu1 %422 }
  0x8e   : > { %365 = vst.msk [vmem:[#allocation2] sm:$0x7f] %vm364_vm6, %v362_v11  ;;  %425 = vst.msk [vmem:[#allocation2 + $0x7] sm:$0x7f] %vm364_vm6, %v423_v12 }
  0x91   : > { %v370_v13 = vpop.permute.xlu0 %369  ;;  %v430_v14 = vpop.permute.xlu1 %429 }
  0x92   : > { %373 = vst.msk [vmem:[#allocation2] sm:$0x7f] %vm372_vm7, %v370_v13  ;;  %432 = vst.msk [vmem:[#allocation2 + $0x7] sm:$0x7f] %vm372_vm7, %v430_v14 }
  0x95   : > { %v459_v15 = vpop.permute.xlu0 %458  ;;  %v378_v16 = vpop.permute.xlu1 %377 }
  0x96   : > { %461 = vst.msk [vmem:[#allocation2 + $0xe] sm:$0x7f] %vm340_vm3, %v459_v15 }
  0x97   : > { %381 = vst.msk [vmem:[#allocation2] sm:$0x7f] %vm380_vm8, %v378_v16 }
  0x99   : > { %v437_v17 = vpop.permute.xlu0 %436  ;;  %v465_v18 = vpop.permute.xlu1 %464 }
  0x9a   : > { %439 = vst.msk [vmem:[#allocation2 + $0x7] sm:$0x7f] %vm380_vm8, %v437_v17 }
  0x9b   : > { %467 = vst.msk [vmem:[#allocation2 + $0xe] sm:$0x7f] %vm348_vm4, %v465_v18 }
  0x9d   : > { %v386_v19 = vpop.permute.xlu0 %385  ;;  %v444_v20 = vpop.permute.xlu1 %443 }
  0x9e   : > { %389 = vst.msk [vmem:[#allocation2] sm:$0x7f] %vm388_vm9, %v386_v19  ;;  %446 = vst.msk [vmem:[#allocation2 + $0x7] sm:$0x7f] %vm388_vm9, %v444_v20 }
  0xa1   : > { %v472_v21 = vpop.permute.xlu0 %471  ;;  %v394_v23 = vpop.permute.xlu1 %393 }
  0xa2   : > { %474 = vst.msk [vmem:[#allocation2 + $0xe] sm:$0x7f] %vm356_vm5, %v472_v21 }
  0xa3   : > { %397 = vst.msk [vmem:[#allocation2] sm:$0x7f] %vm396_vm10, %v394_v23 }
  0xa5   : > { %v451_v24 = vpop.permute.xlu0 %450  ;;  %v479_v25 = vpop.permute.xlu1 %478 }
  0xa6   : > { %453 = vst.msk [vmem:[#allocation2 + $0x7] sm:$0x7f] %vm396_vm10, %v451_v24 }
  0xa7   : > { %481 = vst.msk [vmem:[#allocation2 + $0xe] sm:$0x7f] %vm364_vm6, %v479_v25 }
  0xa9   : > { %v486_v26 = vpop.permute.xlu0 %485  ;;  %v515_v27 = vpop.permute.xlu1 %514 }
  0xaa   : > { %488 = vst.msk [vmem:[#allocation2 + $0xe] sm:$0x7f] %vm372_vm7, %v486_v26 }
  0xab   : > { %517 = vst.msk [vmem:[#allocation2 + $0x15] sm:$0x7f] %vm340_vm3, %v515_v27 }
  0xad   : > { %v493_v28 = vpop.permute.xlu0 %492  ;;  %v521_v29 = vpop.permute.xlu1 %520  ;;  %v734_v30 = vld [vmem:[#allocation2] sm:$0xff] }
  0xae   : > { %495 = vst.msk [vmem:[#allocation2 + $0xe] sm:$0x7f] %vm380_vm8, %v493_v28  ;;  %1874 = vmatmul.mubr.msk.f32.vlgmr.msra.gmra.mxu0 %vm753_vm11, %v734_v30 }
  0xaf   : > { %523 = vst.msk [vmem:[#allocation2 + $0x15] sm:$0x7f] %vm348_vm4, %v521_v29  ;;  %1876 = vmatprep.mubr.msk.f32.mxu0 %vm1934_vm2, %v1933_v22 }
  0xb1   : > { %v500_v31 = vpop.permute.xlu0 %499  ;;  %v528_v32 = vpop.permute.xlu1 %527 }
  0xb2   : > { %502 = vst.msk [vmem:[#allocation2 + $0xe] sm:$0x7f] %vm388_vm9, %v500_v31 }
  0xb3   : > { %530 = vst.msk [vmem:[#allocation2 + $0x15] sm:$0x7f] %vm356_vm5, %v528_v32 }
  0xb5   : > { %v507_v33 = vpop.permute.xlu0 %506  ;;  %v535_v34 = vpop.permute.xlu1 %534 }
  0xb6   : > { %509 = vst.msk [vmem:[#allocation2 + $0xe] sm:$0x7f] %vm396_vm10, %v507_v33 }
  0xb7   : > { %537 = vst.msk [vmem:[#allocation2 + $0x15] sm:$0x7f] %vm364_vm6, %v535_v34 }
  0xb9   : > { %v542_v35 = vpop.permute.xlu0 %541  ;;  %v571_v36 = vpop.permute.xlu1 %570 }
  0xba   : > { %544 = vst.msk [vmem:[#allocation2 + $0x15] sm:$0x7f] %vm372_vm7, %v542_v35 }
  0xbb   : > { %573 = vst.msk [vmem:[#allocation2 + $0x1c] sm:$0x7f] %vm340_vm3, %v571_v36 }
  0xbd   : > { %v549_v37 = vpop.permute.xlu0 %548  ;;  %v577_v38 = vpop.permute.xlu1 %576  ;;  %v735_v39 = vld [vmem:[#allocation2 + $0x8] sm:$0xff] }
  0xbe   : > { %551 = vst.msk [vmem:[#allocation2 + $0x15] sm:$0x7f] %vm380_vm8, %v549_v37  ;;  %1877 = vmatmul.mubr.msk.f32.gmra.mxu0 %vm753_vm11, %v735_v39  ;;  %v1137_v39 = vld [vmem:[%s2724_s3 + $0x70] sm:$0xff] }
  0xbf   : > { %579 = vst.msk [vmem:[#allocation2 + $0x1c] sm:$0x7f] %vm348_vm4, %v577_v38  ;;  %1879 = vmatprep.mubr.msk.f32.mxu0 %vm1934_vm2, %v1933_v22  ;;  %v1138_v38 = vld [vmem:[%s2724_s3 + $0x78] sm:$0xff] }
  0xc0   : > { %1155 = vmatpush1.msra.mxu1 %v1138_v38 }
  0xc1   : > { %v556_v40 = vpop.permute.xlu0 %555  ;;  %v584_v41 = vpop.permute.xlu1 %583  ;;  %1156 = vmatprep.subr.mxu1 %v1933_v22 }
  0xc2   : > { %558 = vst.msk [vmem:[#allocation2 + $0x15] sm:$0x7f] %vm388_vm9, %v556_v40  ;;  %v1136_v40 = vld [vmem:[%s2724_s3 + $0x68] sm:$0xff]  ;;  %1157 = vmatpush1.msra.mxu1 %v1137_v39 }
  0xc3   : > { %586 = vst.msk [vmem:[#allocation2 + $0x1c] sm:$0x7f] %vm356_vm5, %v584_v41  ;;  %1158 = vmatprep.subr.mxu1 %v1933_v22  ;;  %v1135_v41 = vld [vmem:[%s2724_s3 + $0x60] sm:$0xff] }
  0xc4   : > { %1159 = vmatpush1.msra.mxu1 %v1136_v40 }
  0xc5   : > { %v563_v42 = vpop.permute.xlu0 %562  ;;  %v591_v43 = vpop.permute.xlu1 %590  ;;  %1160 = vmatprep.subr.mxu1 %v1933_v22 }
  0xc6   : > { %565 = vst.msk [vmem:[#allocation2 + $0x15] sm:$0x7f] %vm396_vm10, %v563_v42  ;;  %1161 = vmatpush1.msra.mxu1 %v1135_v41 }
  0xc7   : > { %593 = vst.msk [vmem:[#allocation2 + $0x1c] sm:$0x7f] %vm364_vm6, %v591_v43  ;;  %1162 = vmatprep.subr.mxu1 %v1933_v22 }
  0xc9   : > { %v598_v44 = vpop.permute.xlu0 %597  ;;  %v627_v45 = vpop.permute.xlu1 %626 }
  0xca   : > { %600 = vst.msk [vmem:[#allocation2 + $0x1c] sm:$0x7f] %vm372_vm7, %v598_v44 }
  0xcb   : > { %629 = vst.msk [vmem:[#allocation2 + $0x23] sm:$0x7f] %vm340_vm3, %v627_v45 }
  0xcd   : > { %v605_v46 = vpop.permute.xlu0 %604  ;;  %v633_v47 = vpop.permute.xlu1 %632  ;;  %v736_v48 = vld [vmem:[#allocation2 + $0x10] sm:$0xff] }
  0xce   : > { %607 = vst.msk [vmem:[#allocation2 + $0x1c] sm:$0x7f] %vm380_vm8, %v605_v46  ;;  %1880 = vmatmul.mubr.msk.f32.gmra.mxu0 %vm753_vm11, %v736_v48  ;;  %v1134_v46 = vld [vmem:[%s2724_s3 + $0x58] sm:$0xff] }
  0xcf   : > { %635 = vst.msk [vmem:[#allocation2 + $0x23] sm:$0x7f] %vm348_vm4, %v633_v47  ;;  %1882 = vmatprep.mubr.msk.f32.mxu0 %vm1934_vm2, %v1933_v22  ;;  %1163 = vmatpush1.msra.mxu1 %v1134_v46 }
  0xd0   : > { %1164 = vmatprep.subr.mxu1 %v1933_v22 }
  0xd1   : > { %v612_v49 = vpop.permute.xlu0 %611  ;;  %v640_v50 = vpop.permute.xlu1 %639 }
  0xd2   : > { %614 = vst.msk [vmem:[#allocation2 + $0x1c] sm:$0x7f] %vm388_vm9, %v612_v49 }
  0xd3   : > { %642 = vst.msk [vmem:[#allocation2 + $0x23] sm:$0x7f] %vm356_vm5, %v640_v50 }
  0xd5   : > { %v619_v51 = vpop.permute.xlu0 %618  ;;  %v647_v52 = vpop.permute.xlu1 %646 }
  0xd6   : > { %621 = vst.msk [vmem:[#allocation2 + $0x1c] sm:$0x7f] %vm396_vm10, %v619_v51 }
  0xd7   : > { %649 = vst.msk [vmem:[#allocation2 + $0x23] sm:$0x7f] %vm364_vm6, %v647_v52 }
  0xd9   : > { %v654_v53 = vpop.permute.xlu0 %653  ;;  %v683_v54 = vpop.permute.xlu1 %682 }
  0xda   : > { %656 = vst.msk [vmem:[#allocation2 + $0x23] sm:$0x7f] %vm372_vm7, %v654_v53  ;;  %v1133_v53 = vld [vmem:[%s2724_s3 + $0x50] sm:$0xff] }
  0xdb   : > { %685 = vst.msk [vmem:[#allocation2 + $0x2a] sm:$0x7f] %vm340_vm3, %v683_v54  ;;  %v1132_v54 = vld [vmem:[%s2724_s3 + $0x48] sm:$0xff]  ;;  %1165 = vmatpush1.msra.mxu1 %v1133_v53  ;;  %vm920_vm3 = vcmask 518528  }
  0xdc   : > { %1166 = vmatprep.subr.mxu1 %v1933_v22 }
  0xdd   : > { %v661_v55 = vpop.permute.xlu0 %660  ;;  %v689_v56 = vpop.permute.xlu1 %688  ;;  %v737_v57 = vld [vmem:[#allocation2 + $0x18] sm:$0xff]  ;;  %1167 = vmatpush1.msra.mxu1 %v1132_v54 }
  0xde   : > { %663 = vst.msk [vmem:[#allocation2 + $0x23] sm:$0x7f] %vm380_vm8, %v661_v55  ;;  %1883 = vmatmul.mubr.msk.f32.gmra.mxu0 %vm753_vm11, %v737_v57  ;;  %1168 = vmatprep.subr.mxu1 %v1933_v22  ;;  %v1131_v55 = vld [vmem:[%s2724_s3 + $0x40] sm:$0xff] }
  0xdf   : > { %691 = vst.msk [vmem:[#allocation2 + $0x2a] sm:$0x7f] %vm348_vm4, %v689_v56  ;;  %1885 = vmatprep.mubr.msk.f32.mxu0 %vm1934_vm2, %v1933_v22  ;;  %v1130_v56 = vld [vmem:[%s2724_s3 + $0x38] sm:$0xff]  ;;  %1169 = vmatpush1.msra.mxu1 %v1131_v55  ;;  %vm928_vm4 = vcmask 649728  }
  0xe0   : > { %1170 = vmatprep.subr.mxu1 %v1933_v22 }
  0xe1   : > { %v668_v58 = vpop.permute.xlu0 %667  ;;  %v696_v59 = vpop.permute.xlu1 %695  ;;  %1171 = vmatpush1.msra.mxu1 %v1130_v56 }
  0xe2   : > { %670 = vst.msk [vmem:[#allocation2 + $0x23] sm:$0x7f] %vm388_vm9, %v668_v58  ;;  %1172 = vmatprep.subr.mxu1 %v1933_v22 }
  0xe3   : > { %698 = vst.msk [vmem:[#allocation2 + $0x2a] sm:$0x7f] %vm356_vm5, %v696_v59  ;;  %vm936_vm5 = vcmask 780928  }
  0xe5   : > { %v675_v60 = vpop.permute.xlu0 %674  ;;  %v703_v61 = vpop.permute.xlu1 %702 }
  0xe6   : > { %677 = vst.msk [vmem:[#allocation2 + $0x23] sm:$0x7f] %vm396_vm10, %v675_v60  ;;  %v1129_v60 = vld [vmem:[%s2724_s3 + $0x30] sm:$0xff] }
  0xe7   : > { %705 = vst.msk [vmem:[#allocation2 + $0x2a] sm:$0x7f] %vm364_vm6, %v703_v61  ;;  %v1128_v61 = vld [vmem:[%s2724_s3 + $0x28] sm:$0xff]  ;;  %1173 = vmatpush1.msra.mxu1 %v1129_v60  ;;  %vm944_vm6 = vcmask 912128   ;;  %v1354_v60 = vld [vmem:[%s2726_s5 + $0xf8] sm:$0xff] }
  0xe8   : > { %1174 = vmatprep.subr.mxu1 %v1933_v22  ;;  %1425 = vmatprep.subr.mxu0 %v1354_v60 }
  0xe9   : > { %v710_v62 = vpop.permute.xlu0 %709  ;;  %v717_v63 = vpop.permute.xlu1 %716  ;;  %1175 = vmatpush1.msra.mxu1 %v1128_v61  ;;  %v1353_v61 = vld [vmem:[%s2726_s5 + $0xf0] sm:$0xff] }
  0xea   : > { %712 = vst.msk [vmem:[#allocation2 + $0x2a] sm:$0x7f] %vm372_vm7, %v710_v62  ;;  %1176 = vmatprep.subr.mxu1 %v1933_v22  ;;  %vm952_vm7 = vcmask 1043328   ;;  %1426 = vmatpush1.msra.mxu0 %v1353_v61 }
  0xeb   : > { %719 = vst.msk [vmem:[#allocation2 + $0x2a] sm:$0x7f] %vm380_vm8, %v717_v63  ;;  %vm969_vm8 = vcmask 259203  }
  0xed   : > { %v724_v0 = vpop.permute.xlu0 %723  ;;  %v731_v1 = vpop.permute.xlu1 %730  ;;  %v738_v2 = vld [vmem:[#allocation2 + $0x20] sm:$0xff] }
  0xee   : > { %726 = vst.msk [vmem:[#allocation2 + $0x2a] sm:$0x7f] %vm388_vm9, %v724_v0  ;;  %1886 = vmatmul.mubr.msk.f32.gmra.mxu0 %vm753_vm11, %v738_v2  ;;  %vm977_vm9 = vcmask 390403  }
  0xef   : > { %733 = vst.msk [vmem:[#allocation2 + $0x2a] sm:$0x7f] %vm396_vm10, %v731_v1  ;;  %1888 = vmatprep.mubr.msk.f32.mxu0 %vm1934_vm2, %v1933_v22  ;;  %vm986_vm10 = vcmask 521603  }
  0xf6   : > { %v739_v3 = vld [vmem:[#allocation2 + $0x28] sm:$0xff]  ;;  %v740_v4 = vld [vmem:[#allocation2 + $0x30] sm:$0x1] }
  0xf7   : > { %1889 = vmatmul.mubr.msk.f32.gmra.mxu0 %vm753_vm11, %v739_v3 }
  0xf8   : > { %1891 = vmatprep.mubr.msk.f32.mxu0 %vm1934_vm2, %v1933_v22  ;;  %vm912_vm2 = vcmask 387328  }
  0xfb   : > { %1892 = vmatmul.mubr.msk.f32.gmra.mxu0 %vm753_vm11, %v740_v4  ;;  %vm995_vm11 = vcmask 652803  }
 0x16e   : > { %v845_v6 = vpop.f32.mrf.mxu0 }
 0x16f   : > { %v846_v7 = vadd.f32 %v2235_v5, %v845_v6 }
 0x170   : > { %v1875_v8 = vpop.f32.mrf.mxu0 }
 0x171   : > { %v879_v9 = vmax.f32 %v846_v7, 0.0  ;;  %v1127_v8 = vld [vmem:[%s2724_s3 + $0x20] sm:$0xff] }
 0x172   : > { %1177 = vmatpush1.msra.mxu1 %v1127_v8  ;;  %v1342_v8 = vld [vmem:[%s2726_s5 + $0x98] sm:$0xff] }
 0x173   : > { %887 = vst.msk [vmem:[#allocation3] sm:$0xff] %vm886_vm12, %v879_v9  ;;  %1178 = vmatprep.subr.mxu1 %v1933_v22 }
 0x17a   : > { %v907_v10 = vld [vmem:[#allocation3 + $0x2] ss:$2 sm:$0x7]  ;;  %v899_v11 = vld [vmem:[#allocation3 + $0x1] ss:$2 sm:$0x7] }
 0x17b   : > { %909 = vrot.lane.b32.xlu1 %v907_v10, %s1935_s26  ;;  %901 = vrot.lane.b32.xlu0 %v899_v11, %s1929_s18  ;;  %v895_v12 = vld [vmem:[#allocation3] ss:$2 sm:$0x7] }
 0x17c   : > { %897 = vst.msk [vmem:[#allocation4] sm:$0x7] %vm896_vm13, %v895_v12 }
 0x17e   : > { %v850_v13 = vpop.f32.mrf.mxu0 }
 0x17f   : > { %v851_v14 = vadd.f32 %v2235_v5, %v850_v13 }
 0x180   : > { %v1878_v15 = vpop.f32.mrf.mxu0 }
 0x181   : > { %v880_v16 = vmax.f32 %v851_v14, 0.0 }
 0x183   : > { %888 = vst.msk [vmem:[#allocation3 + $0x8] sm:$0xff] %vm886_vm12, %v880_v16  ;;  %v1125_v16 = vld [vmem:[%s2724_s3 + $0x10] sm:$0xff] }
 0x18a   : > { %v923_v17 = vld [vmem:[#allocation3 + $0x8] ss:$2 sm:$0x7]  ;;  %v915_v18 = vld [vmem:[#allocation3 + $0x7] ss:$2 sm:$0x7] }
 0x18b   : > { %925 = vrot.lane.b32.xlu1 %v923_v17, %s1936_s16  ;;  %917 = vrot.lane.b32.xlu0 %v915_v18, %s1937_s17  ;;  %v931_v20 = vld [vmem:[#allocation3 + $0x9] ss:$2 sm:$0x7]  ;;  %v1124_v17 = vld [vmem:[%s2724_s3 + $0x8] sm:$0xff] }
 0x18e   : > { %v855_v19 = vpop.f32.mrf.mxu0 }
 0x18f   : > { %v856_v21 = vadd.f32 %v2235_v5, %v855_v19  ;;  %933 = vrot.lane.b32.xlu0 %v931_v20, %s1938_s19 }
 0x190   : > { %v1881_v23 = vpop.f32.mrf.mxu0 }
 0x191   : > { %v881_v24 = vmax.f32 %v856_v21, 0.0  ;;  %v1123_v21 = vld [vmem:[%s2724_s3] sm:$0xff] }
 0x193   : > { %889 = vst.msk [vmem:[#allocation3 + $0x10] sm:$0xff] %vm886_vm12, %v881_v24 }
 0x19a   : > { %v947_v25 = vld [vmem:[#allocation3 + $0xf] ss:$2 sm:$0x7]  ;;  %v939_v26 = vld [vmem:[#allocation3 + $0xe] ss:$2 sm:$0x7] }
 0x19b   : > { %949 = vrot.lane.b32.xlu0 %v947_v25, %s1939_s20  ;;  %941 = vrot.lane.b32.xlu1 %v939_v26, %s1940_s21  ;;  %v971_v27 = vld [vmem:[#allocation3 + $0x10] ss:$2 sm:$0x7]  ;;  %v963_v28 = vld [vmem:[#allocation3 + $0xf] ss:$2 sm:$0x7] }
 0x19c   : > { %v955_v29 = vld [vmem:[#allocation3 + $0x10] ss:$2 sm:$0x7]  ;;  %v973_v30 = vrot.slane %v971_v27, 5  ;;  %v965_v31 = vrot.slane %v963_v28, 5 }
 0x19d   : > { %956 = vst.msk [vmem:[#allocation4 + $0x8] sm:$0x7] %vm896_vm13, %v955_v29  ;;  %v957_v32 = vld [vmem:[#allocation3 + $0xe] ss:$2 sm:$0x7]  ;;  %vm1004_vm13 = vcmask 784003  }
 0x19e   : > { %v860_v33 = vpop.f32.mrf.mxu0  ;;  %v959_v34 = vrot.slane %v957_v32, 5  ;;  %v1140_v25 = vld [vmem:[%s2724_s3 + $0x88] sm:$0xff]  ;;  %v1139_v32 = vld [vmem:[%s2724_s3 + $0x80] sm:$0xff] }
 0x19f   : > { %v861_v35 = vadd.f32 %v2235_v5, %v860_v33  ;;  %974 = vrot.lane.b32.xlu0 %v973_v30, %s1935_s26  ;;  %966 = vrot.lane.b32.xlu1 %v965_v31, %s1929_s18 }
 0x1a0   : > { %v1884_v36 = vpop.f32.mrf.mxu0  ;;  %962 = vst.msk [vmem:[#allocation4] sm:$0x38] %vm961_vm14, %v959_v34 }
 0x1a1   : > { %v882_v37 = vmax.f32 %v861_v35, 0.0 }
 0x1a3   : > { %890 = vst.msk [vmem:[#allocation3 + $0x18] sm:$0xff] %vm886_vm12, %v882_v37 }
 0x1aa   : > { %v989_v42 = vld [vmem:[#allocation3 + $0x16] ss:$2 sm:$0x7]  ;;  %v980_v43 = vld [vmem:[#allocation3 + $0x15] ss:$2 sm:$0x7] }
 0x1ab   : > { %v991_v44 = vrot.slane %v989_v42, 5  ;;  %v982_v45 = vrot.slane %v980_v43, 5  ;;  %v998_v47 = vld [vmem:[#allocation3 + $0x17] ss:$2 sm:$0x7] }
 0x1ac   : > { %v1000_v50 = vrot.slane %v998_v47, 5 }
 0x1ad   : > { %992 = vrot.lane.b32.xlu0 %v991_v44, %s1936_s16  ;;  %983 = vrot.lane.b32.xlu1 %v982_v45, %s1937_s17 }
 0x1ae   : > { %v865_v48 = vpop.f32.mrf.mxu0 }
 0x1af   : > { %v866_v49 = vadd.f32 %v2235_v5, %v865_v48 }
 0x1b0   : > { %v1887_v51 = vpop.f32.mrf.mxu0 }
 0x1b1   : > { %v883_v52 = vmax.f32 %v866_v49, 0.0  ;;  %1001 = vrot.lane.b32.xlu1 %v1000_v50, %s1938_s19 }
 0x1b3   : > { %891 = vst.msk [vmem:[#allocation3 + $0x20] sm:$0xff] %vm886_vm12, %v883_v52 }
 0x1b7   : > { %v870_v57 = vpop.f32.mrf.mxu0 }
 0x1b8   : > { %v871_v58 = vadd.f32 %v2235_v5, %v870_v57 }
 0x1b9   : > { %v1890_v59 = vpop.f32.mrf.mxu0 }
 0x1ba   : > { %v884_v62 = vmax.f32 %v871_v58, 0.0  ;;  %v1047_v63 = vld [vmem:[#allocation3 + $0x1e] ss:$2 sm:$0x7] }
 0x1bb   : > { %v875_v0 = vpop.f32.mrf.mxu0  ;;  %v1049_v1 = vrot.slane %v1047_v63, 2  ;;  %v1037_v2 = vld [vmem:[#allocation3 + $0x1d] ss:$2 sm:$0x7]  ;;  %v1351_v63 = vld [vmem:[%s2726_s5 + $0xe0] sm:$0xff] }
 0x1bc   : > { %892 = vst.msk [vmem:[#allocation3 + $0x28] sm:$0xff] %vm886_vm12, %v884_v62  ;;  %v876_v3 = vadd.f32 %v2235_v5, %v875_v0  ;;  %v1039_v4 = vrot.slane %v1037_v2, 2  ;;  %v1058_v7 = vld [vmem:[#allocation3 + $0x23] ss:$2 sm:$0x7]  ;;  %v1352_v62 = vld [vmem:[%s2726_s5 + $0xe8] sm:$0xff] }
 0x1bd   : > { %1050 = vrot.lane.b32.xlu1 %v1049_v1, %s1935_s26  ;;  %v1893_v6 = vpop.f32.mrf.mxu0  ;;  %v1025_v10 = vld [vmem:[#allocation3 + $0x1e] ss:$2 sm:$0x7]  ;;  %v1060_v11 = vrot.slane %v1058_v7, 2  ;;  %1427 = vmatprep.subr.mxu0 %v1352_v62  ;;  %v1348_v1 = vld [vmem:[%s2726_s5 + $0xc8] sm:$0xff]  ;;  %v1347_v2 = vld [vmem:[%s2726_s5 + $0xc0] sm:$0xff] }
 0x1be   : > { %v885_v9 = vmax.f32 %v876_v3, 0.0  ;;  %1040 = vrot.lane.b32.xlu0 %v1039_v4, %s1929_s18  ;;  %v1126_v5 = vld [vmem:[%s2724_s3 + $0x18] sm:$0xff]  ;;  %v1027_v12 = vrot.slane %v1025_v10, 5  ;;  %v1349_v0 = vld [vmem:[%s2726_s5 + $0xd0] sm:$0xff]  ;;  %1428 = vmatpush1.msra.mxu0 %v1351_v63  ;;  %v1344_v6 = vld [vmem:[%s2726_s5 + $0xa8] sm:$0xff] }
 0x1bf   : > { %v1030_v13 = vld [vmem:[#allocation3 + $0x1c] ss:$2 sm:$0x7]  ;;  %1179 = vmatpush1.msra.mxu1 %v1126_v5  ;;  %v1016_v30 = vld [vmem:[#allocation3 + $0x1d] ss:$2 sm:$0x7] }
 0x1c0   : > { %894 = vst.msk [vmem:[#allocation3 + $0x30] sm:$0x1] %vm893_vm15, %v885_v9  ;;  %v1007_v14 = vld [vmem:[#allocation3 + $0x1c] ss:$2 sm:$0x7]  ;;  %v1032_v15 = vrot.slane %v1030_v13, 2  ;;  %1180 = vmatprep.subr.mxu1 %v1933_v22 }
 0x1c1   : > { %1029 = vst.msk [vmem:[#allocation4 + $0x8] sm:$0x38] %vm961_vm14, %v1027_v12  ;;  %1181 = vmatpush1.msra.mxu1 %v1125_v16  ;;  %v1009_v19 = vrot.slane %v1007_v14, 5  ;;  %v1018_v34 = vrot.slane %v1016_v30, 5  ;;  %vm1043_vm14 = vcmask 261254   ;;  %v1346_v3 = vld [vmem:[%s2726_s5 + $0xb8] sm:$0xff] }
 0x1c2   : > { %1061 = vrot.lane.b32.xlu0 %v1060_v11, %s1937_s17  ;;  %1035 = vst.msk [vmem:[#allocation4] sm:$0xc0] %vm1034_vm0, %v1032_v15  ;;  %1182 = vmatprep.subr.mxu1 %v1933_v22  ;;  %v1345_v4 = vld [vmem:[%s2726_s5 + $0xb0] sm:$0xff]  ;;  %v1343_v7 = vld [vmem:[%s2726_s5 + $0xa0] sm:$0xff]  ;;  %v1340_v10 = vld [vmem:[%s2726_s5 + $0x88] sm:$0xff]  ;;  %s330_s17 = scalar_lea.vmem %s2730_s9, %s1737_s27 }
 0x1c3   : > { %v1069_v18 = vld [vmem:[#allocation3 + $0x24] ss:$2 sm:$0x7]  ;;  %1036 = vst.msk [vmem:[#allocation4 + $0x10] sm:$0x1] %vm893_vm15, %v1032_v15  ;;  %1183 = vmatpush1.msra.mxu1 %v1124_v17  ;;  %v1341_v9 = vld [vmem:[%s2726_s5 + $0x90] sm:$0xff] }
 0x1c4   : > { %v1071_v20 = vrot.slane %v1069_v18, 2  ;;  %v1080_v23 = vld [vmem:[#allocation3 + $0x25] ss:$2 sm:$0x7]  ;;  %1184 = vmatprep.subr.mxu1 %v1933_v22  ;;  %v1337_v12 = vld [vmem:[%s2726_s5 + $0x70] sm:$0xff]  ;;  %v1336_v13 = vld [vmem:[%s2726_s5 + $0x68] sm:$0xff] }
 0x1c5   : > { %v1091_v24 = vld [vmem:[#allocation3 + $0x2a] ss:$2 sm:$0x7]  ;;  %1185 = vmatpush1.msra.mxu1 %v1123_v21  ;;  %v1082_v28 = vrot.slane %v1080_v23, 2  ;;  %v1338_v11 = vld [vmem:[%s2726_s5 + $0x78] sm:$0xff]  ;;  %v1333_v16 = vld [vmem:[%s2726_s5 + $0x50] sm:$0xff] }
 0x1c6   : > { %1010 = vrot.lane.b32.xlu0 %v1009_v19, %s1940_s21  ;;  %1072 = vrot.lane.b32.xlu1 %v1071_v20, %s1936_s16  ;;  %v1093_v29 = vrot.slane %v1091_v24, 2  ;;  %v1102_v31 = vld [vmem:[#allocation3 + $0x2b] ss:$2 sm:$0x7]  ;;  %v1334_v15 = vld [vmem:[%s2726_s5 + $0x58] sm:$0xff]  ;;  %v1332_v17 = vld [vmem:[%s2726_s5 + $0x48] sm:$0xff] }
 0x1c7   : > { %v1113_v26 = vld [vmem:[#allocation3 + $0x2c] ss:$2 sm:$0x7]  ;;  %1214 = vmatprep.subr.mxu1 %v1933_v22  ;;  %v1104_v33 = vrot.slane %v1102_v31, 2  ;;  %v1330_v19 = vld [vmem:[%s2726_s5 + $0x38] sm:$0xff]  ;;  %v1329_v20 = vld [vmem:[%s2726_s5 + $0x30] sm:$0xff] }
 0x1c8   : > { %v1115_v27 = vrot.slane %v1113_v26, 2  ;;  %1215 = vmatpush2.msra.mxu1 %v1140_v25  ;;  %v1339_v5 = vld [vmem:[%s2726_s5 + $0x80] sm:$0xff]  ;;  %v1328_v21 = vld [vmem:[%s2726_s5 + $0x28] sm:$0xff]  ;;  %v1326_v24 = vld [vmem:[%s2726_s5 + $0x18] sm:$0xff] }
 0x1c9   : > { %1216 = vmatprep.subr.mxu1 %v1933_v22  ;;  %v1335_v14 = vld [vmem:[%s2726_s5 + $0x60] sm:$0xff]  ;;  %v1325_v25 = vld [vmem:[%s2726_s5 + $0x10] sm:$0xff]  ;;  %v1324_v26 = vld [vmem:[%s2726_s5 + $0x8] sm:$0xff] }
 0x1ca   : > { %1117 = vst.msk [vmem:[#allocation4 + $0x8] sm:$0xc0] %vm1034_vm0, %v1115_v27  ;;  %1083 = vrot.lane.b32.xlu0 %v1082_v28, %s1938_s19  ;;  %1094 = vrot.lane.b32.xlu1 %v1093_v29, %s1940_s21  ;;  %vm1053_vm0 = vcmask 392454   ;;  %v1331_v18 = vld [vmem:[%s2726_s5 + $0x40] sm:$0xff]  ;;  %v1386_v28 = vld [vmem:[%s2726_s5 + $0x1f8] sm:$0xff] }
 0x1cb   : > { %1118 = vst.msk [vmem:[#allocation4 + $0x18] sm:$0x1] %vm893_vm15, %v1115_v27  ;;  %1217 = vmatpush2.msra.mxu1 %v1139_v32  ;;  %vm1045_vm15 = vcmask 254080   ;;  %v1327_v23 = vld [vmem:[%s2726_s5 + $0x20] sm:$0xff]  ;;  %v1385_v29 = vld [vmem:[%s2726_s5 + $0x1f0] sm:$0xff]  ;;  %v1384_v30 = vld [vmem:[%s2726_s5 + $0x1e8] sm:$0xff] }
 0x1cc   : > { %v1323_v27 = vld [vmem:[%s2726_s5] sm:$0xff]  ;;  %v1382_v32 = vld [vmem:[%s2726_s5 + $0x1d8] sm:$0xff] }
 0x1cd   : > { %v1383_v31 = vld [vmem:[%s2726_s5 + $0x1e0] sm:$0xff] }
 0x1ce   : > { %1105 = vrot.lane.b32.xlu0 %v1104_v33, %s1939_s20  ;;  %1019 = vrot.lane.b32.xlu1 %v1018_v34, %s1939_s20  ;;  %v1381_v33 = vld [vmem:[%s2726_s5 + $0x1d0] sm:$0xff]  ;;  %v1380_v34 = vld [vmem:[%s2726_s5 + $0x1c8] sm:$0xff] }
 0x1d1   : > { %v1120_v35 = vld [vmem:[#allocation4 + $0x8] sm:$0xff] }
 0x1d2   : > { %1810 = vmatprep.mubr.msk.f32.mxu1 %vm886_vm12, %v1120_v35  ;;  %v1122_v58 = vld [vmem:[#allocation4 + $0x18] sm:$0x1]  ;;  %v1379_v35 = vld [vmem:[%s2726_s5 + $0x1c0] sm:$0xff] }
 0x1ed   : > { %v910_v36 = vpop.permute.xlu1 %909  ;;  %v902_v37 = vpop.permute.xlu0 %901 }
 0x1ee   : > { %905 = vst.msk [vmem:[#allocation4] sm:$0x7] %vm904_vm1, %v902_v37  ;;  %vm1055_vm1 = vcmask 385280   ;;  %v1377_v37 = vld [vmem:[%s2726_s5 + $0x1b0] sm:$0xff] }
 0x1ef   : > { %913 = vst.msk [vmem:[#allocation4] sm:$0x7] %vm912_vm2, %v910_v36  ;;  %vm1064_vm2 = vcmask 523654   ;;  %v1378_v36 = vld [vmem:[%s2726_s5 + $0x1b8] sm:$0xff] }
 0x1fd   : > { %v926_v38 = vpop.permute.xlu1 %925  ;;  %v918_v39 = vpop.permute.xlu0 %917 }
 0x1fe   : > { %921 = vst.msk [vmem:[#allocation4] sm:$0x7] %vm920_vm3, %v918_v39  ;;  %vm1066_vm3 = vcmask 516480   ;;  %v1231_v39 = vlaneseq }
 0x1ff   : > { %929 = vst.msk [vmem:[#allocation4] sm:$0x7] %vm928_vm4, %v926_v38  ;;  %vm1013_vm4 = vcmask 915203   ;;  %v1376_v38 = vld [vmem:[%s2726_s5 + $0x1a8] sm:$0xff] }
 0x201   : > { %v934_v40 = vpop.permute.xlu0 %933 }
 0x202   : > { %937 = vst.msk [vmem:[#allocation4] sm:$0x7] %vm936_vm5, %v934_v40  ;;  %vm1075_vm5 = vcmask 654854   ;;  %v1941_v40 = vmov 1966171168  }
 0x20d   : > { %v950_v41 = vpop.permute.xlu0 %949  ;;  %v942_v42 = vpop.permute.xlu1 %941 }
 0x20e   : > { %945 = vst.msk [vmem:[#allocation4] sm:$0x7] %vm944_vm6, %v942_v42  ;;  %vm1077_vm6 = vcmask 647680  }
 0x20f   : > { %953 = vst.msk [vmem:[#allocation4] sm:$0x7] %vm952_vm7, %v950_v41  ;;  %vm1086_vm7 = vcmask 786054   ;;  %v1238_v41 = vunpack.c.l.s4 %v1941_v40 }
 0x211   : > { %v975_v43 = vpop.permute.xlu0 %974  ;;  %v967_v44 = vpop.permute.xlu1 %966  ;;  %v1239_v42 = vunpack.c.0.s8 %v1238_v41 }
 0x212   : > { %970 = vst.msk [vmem:[#allocation4] sm:$0x38] %vm969_vm8, %v967_v44  ;;  %vm1088_vm8 = vcmask 778880   ;;  %v1809_v44 = vld [vmem:[%s2725_s4] ss:$0 sm:$0xff] }
 0x213   : > { %978 = vst.msk [vmem:[#allocation4] sm:$0x38] %vm977_vm9, %v975_v43  ;;  %vm1097_vm9 = vcmask 917254   ;;  %v2484_v43 = vshrl.u32 %v1231_v39, 7 }
 0x215   : > { %v2604_v41 = vsub.s32 0, %v2484_v43 }
 0x21f   : > { %v993_v45 = vpop.permute.xlu0 %992  ;;  %v984_v46 = vpop.permute.xlu1 %983 }
 0x220   : > { %987 = vst.msk [vmem:[#allocation4] sm:$0x38] %vm986_vm10, %v984_v46  ;;  %vm1099_vm10 = vcmask 910080   ;;  %v1374_v46 = vld [vmem:[%s2726_s5 + $0x198] sm:$0xff] }
 0x221   : > { %996 = vst.msk [vmem:[#allocation4] sm:$0x38] %vm995_vm11, %v993_v45  ;;  %vm1108_vm11 = vcmask 1048454   ;;  %v1375_v45 = vld [vmem:[%s2726_s5 + $0x1a0] sm:$0xff] }
 0x223   : > { %v1002_v47 = vpop.permute.xlu1 %1001 }
 0x224   : > { %1005 = vst.msk [vmem:[#allocation4] sm:$0x38] %vm1004_vm13, %v1002_v47  ;;  %vm1110_vm13 = vcmask 1041280  }
 0x22f   : > { %v1051_v48 = vpop.permute.xlu1 %1050 }
 0x230   : > { %v1041_v49 = vpop.permute.xlu0 %1040 }
 0x231   : > { %1044 = vst.msk [vmem:[#allocation4] sm:$0xc0] %vm1043_vm14, %v1041_v49  ;;  %vm1022_vm14 = vcmask 1046403  }
 0x232   : > { %1046 = vst.msk [vmem:[#allocation4 + $0x10] sm:$0x1] %vm1045_vm15, %v1041_v49  ;;  %v1372_v49 = vld [vmem:[%s2726_s5 + $0x188] sm:$0xff]  ;;  %vm1262_vm15 = vcmp.ge.s32.totalorder %v1231_v39, 32 }
 0x233   : > { %1054 = vst.msk [vmem:[#allocation4] sm:$0xc0] %vm1053_vm0, %v1051_v48  ;;  %vm1263_vm0 = vcmp.lt.s32.totalorder %v1231_v39, 64 }
 0x234   : > { %1056 = vst.msk [vmem:[#allocation4 + $0x10] sm:$0x1] %vm1055_vm1, %v1051_v48  ;;  %v1062_v50 = vpop.permute.xlu0 %1061  ;;  %v1373_v48 = vld [vmem:[%s2726_s5 + $0x190] sm:$0xff]  ;;  %vm1264_vm1 = vmand %vm1262_vm15, %vm1263_vm0 }
 0x235   : > { %1065 = vst.msk [vmem:[#allocation4] sm:$0xc0] %vm1064_vm2, %v1062_v50  ;;  %vm1270_vm2 = vcmp.ge.s32.totalorder %v1231_v39, 64 }
 0x236   : > { %1067 = vst.msk [vmem:[#allocation4 + $0x10] sm:$0x1] %vm1066_vm3, %v1062_v50  ;;  %vm1271_vm3 = vcmp.lt.s32.totalorder %v1231_v39, 96 }
 0x238   : > { %v1011_v51 = vpop.permute.xlu0 %1010  ;;  %v1073_v52 = vpop.permute.xlu1 %1072 }
 0x239   : > { %1014 = vst.msk [vmem:[#allocation4] sm:$0x38] %vm1013_vm4, %v1011_v51  ;;  %v1242_v51 = vsub.s32 %v1239_v42, %v2484_v43  ;;  %vm1272_vm4 = vmand %vm1270_vm2, %vm1271_vm3  ;;  %v1403_v42 = vsub.s32 1, %v2484_v43 }
 0x23a   : > { %1076 = vst.msk [vmem:[#allocation4] sm:$0xc0] %vm1075_vm5, %v1073_v52  ;;  %vm1278_vm5 = vcmp.ge.s32.totalorder %v1231_v39, 96 }
 0x23b   : > { %1078 = vst.msk [vmem:[#allocation4 + $0x10] sm:$0x1] %vm1077_vm6, %v1073_v52  ;;  %vm1279_vm6 = vcmp.lt.s32.totalorder %v1231_v39, 128 }
 0x23c   : > { %v1084_v53 = vpop.permute.xlu0 %1083  ;;  %v1095_v54 = vpop.permute.xlu1 %1094 }
 0x23d   : > { %1087 = vst.msk [vmem:[#allocation4] sm:$0xc0] %vm1086_vm7, %v1084_v53  ;;  %vm1280_vm7 = vmand %vm1278_vm5, %vm1279_vm6 }
 0x23e   : > { %1089 = vst.msk [vmem:[#allocation4 + $0x10] sm:$0x1] %vm1088_vm8, %v1084_v53  ;;  %vm1422_vm8 = vcmask 261120   ;;  %v1597_v53 = vld [vmem:[%s2728_s7 + $0xe0] sm:$0xff] }
 0x23f   : > { %1098 = vst.msk [vmem:[#allocation4] sm:$0xc0] %vm1097_vm9, %v1095_v54 }
 0x240   : > { %1100 = vst.msk [vmem:[#allocation4 + $0x10] sm:$0x1] %vm1099_vm10, %v1095_v54  ;;  %v1106_v55 = vpop.permute.xlu0 %1105  ;;  %v1020_v56 = vpop.permute.xlu1 %1019  ;;  %v1371_v54 = vld [vmem:[%s2726_s5 + $0x180] sm:$0xff] }
 0x241   : > { %1109 = vst.msk [vmem:[#allocation4] sm:$0xc0] %vm1108_vm11, %v1106_v55 }
 0x242   : > { %1111 = vst.msk [vmem:[#allocation4 + $0x10] sm:$0x1] %vm1110_vm13, %v1106_v55  ;;  %v1370_v55 = vld [vmem:[%s2726_s5 + $0x178] sm:$0xff] }
 0x243   : > { %1023 = vst.msk [vmem:[#allocation4] sm:$0x38] %vm1022_vm14, %v1020_v56 }
 0x249   : > { %v1121_v59 = vld [vmem:[#allocation4 + $0x10] sm:$0x1] }
 0x24a   : > { %v1119_v57 = vld [vmem:[#allocation4] sm:$0xff] }
 0x24b   : > { %1219 = vmatmul.mubr.f32.vlgmr.msra.gmra.mxu1 %v1119_v57 }
 0x24c   : > { %1811 = vmatprep.mubr.msk.f32.mxu1 %vm886_vm12, %v1122_v58  ;;  %vm2503_vm12 = vcmp.lt.s32.totalorder %v1231_v39, 32  ;;  %v1369_v58 = vld [vmem:[%s2726_s5 + $0x170] sm:$0xff] }
 0x24f   : > { %1224 = vmatmul.mubr.f32.gmra.mxu1 %v1121_v59  ;;  %v1368_v59 = vld [vmem:[%s2726_s5 + $0x168] sm:$0xff] }
 0x250   : > { %1560 = vmatprep.mubr.f32.mxu1 %v1933_v22  ;;  %v1350_v22 = vld [vmem:[%s2726_s5 + $0xd8] sm:$0xff] }
 0x251   : > { %1429 = vmatprep.subr.mxu0 %v1350_v22  ;;  %v1367_v22 = vld [vmem:[%s2726_s5 + $0x160] sm:$0xff] }
 0x252   : > { %1430 = vmatpush1.msra.mxu0 %v1349_v0  ;;  %v1366_v0 = vld [vmem:[%s2726_s5 + $0x158] sm:$0xff] }
 0x253   : > { %1431 = vmatprep.subr.mxu0 %v1348_v1 }
 0x254   : > { %1432 = vmatpush1.msra.mxu0 %v1347_v2 }
 0x255   : > { %1433 = vmatprep.subr.mxu0 %v1346_v3 }
 0x256   : > { %1434 = vmatpush1.msra.mxu0 %v1345_v4  ;;  %v1365_v4 = vld [vmem:[%s2726_s5 + $0x150] sm:$0xff] }
 0x257   : > { %1435 = vmatprep.subr.mxu0 %v1344_v6  ;;  %v1364_v6 = vld [vmem:[%s2726_s5 + $0x148] sm:$0xff] }
 0x258   : > { %1436 = vmatpush1.msra.mxu0 %v1343_v7  ;;  %v1363_v7 = vld [vmem:[%s2726_s5 + $0x140] sm:$0xff] }
 0x259   : > { %1437 = vmatprep.subr.mxu0 %v1342_v8 }
 0x25a   : > { %1438 = vmatpush1.msra.mxu0 %v1341_v9 }
 0x25b   : > { %1439 = vmatprep.subr.mxu0 %v1340_v10 }
 0x25c   : > { %1440 = vmatpush1.msra.mxu0 %v1339_v5 }
 0x25d   : > { %1441 = vmatprep.subr.mxu0 %v1338_v11  ;;  %v1394_v11 = vld [vmem:[%s2726_s5 + $0x238] sm:$0xff] }
 0x25e   : > { %1442 = vmatpush1.msra.mxu0 %v1337_v12  ;;  %v1362_v12 = vld [vmem:[%s2726_s5 + $0x138] sm:$0xff]  ;;  %1520 = vmatprep.subr.mxu1 %v1394_v11  ;;  %v1570_v11 = vld [vmem:[%s2728_s7 + $0x8] sm:$0xff] }
 0x25f   : > { %1443 = vmatprep.subr.mxu0 %v1336_v13  ;;  %v1393_v13 = vld [vmem:[%s2726_s5 + $0x230] sm:$0xff] }
 0x260   : > { %1444 = vmatpush1.msra.mxu0 %v1335_v14  ;;  %v1361_v14 = vld [vmem:[%s2726_s5 + $0x130] sm:$0xff]  ;;  %1521 = vmatpush1.msra.mxu1 %v1393_v13  ;;  %v1569_v13 = vld [vmem:[%s2728_s7] sm:$0xff] }
 0x261   : > { %1445 = vmatprep.subr.mxu0 %v1334_v15 }
 0x262   : > { %1446 = vmatpush1.msra.mxu0 %v1333_v16  ;;  %v1392_v16 = vld [vmem:[%s2726_s5 + $0x228] sm:$0xff] }
 0x263   : > { %1447 = vmatprep.subr.mxu0 %v1332_v17  ;;  %v1360_v17 = vld [vmem:[%s2726_s5 + $0x128] sm:$0xff]  ;;  %1522 = vmatprep.subr.mxu1 %v1392_v16 }
 0x264   : > { %1448 = vmatpush1.msra.mxu0 %v1331_v18  ;;  %v1391_v18 = vld [vmem:[%s2726_s5 + $0x220] sm:$0xff] }
 0x265   : > { %1449 = vmatprep.subr.mxu0 %v1330_v19  ;;  %1523 = vmatpush1.msra.mxu1 %v1391_v18 }
 0x266   : > { %1450 = vmatpush1.msra.mxu0 %v1329_v20  ;;  %v1359_v20 = vld [vmem:[%s2726_s5 + $0x120] sm:$0xff] }
 0x267   : > { %1451 = vmatprep.subr.mxu0 %v1328_v21  ;;  %v1390_v21 = vld [vmem:[%s2726_s5 + $0x218] sm:$0xff] }
 0x268   : > { %1452 = vmatpush1.msra.mxu0 %v1327_v23  ;;  %v1358_v23 = vld [vmem:[%s2726_s5 + $0x118] sm:$0xff]  ;;  %1524 = vmatprep.subr.mxu1 %v1390_v21 }
 0x269   : > { %1453 = vmatprep.subr.mxu0 %v1326_v24 }
 0x26a   : > { %1454 = vmatpush1.msra.mxu0 %v1325_v25  ;;  %v1389_v25 = vld [vmem:[%s2726_s5 + $0x210] sm:$0xff] }
 0x26b   : > { %1455 = vmatprep.subr.mxu0 %v1324_v26  ;;  %v1357_v26 = vld [vmem:[%s2726_s5 + $0x110] sm:$0xff]  ;;  %1525 = vmatpush1.msra.mxu1 %v1389_v25 }
 0x26c   : > { %1456 = vmatpush1.msra.mxu0 %v1323_v27  ;;  %v1388_v27 = vld [vmem:[%s2726_s5 + $0x208] sm:$0xff] }
 0x26d   : > { %1457 = vmatprep.subr.mxu0 %v1386_v28  ;;  %1526 = vmatprep.subr.mxu1 %v1388_v27 }
 0x26e   : > { %1458 = vmatpush2.msra.mxu0 %v1385_v29  ;;  %v1356_v29 = vld [vmem:[%s2726_s5 + $0x108] sm:$0xff] }
 0x26f   : > { %1459 = vmatprep.subr.mxu0 %v1384_v30  ;;  %v1387_v30 = vld [vmem:[%s2726_s5 + $0x200] sm:$0xff] }
 0x270   : > { %1460 = vmatpush2.msra.mxu0 %v1383_v31  ;;  %v1355_v31 = vld [vmem:[%s2726_s5 + $0x100] sm:$0xff]  ;;  %1527 = vmatpush1.msra.mxu1 %v1387_v30 }
 0x271   : > { %1461 = vmatprep.subr.mxu0 %v1382_v32 }
 0x272   : > { %1462 = vmatpush2.msra.mxu0 %v1381_v33  ;;  %v1600_v33 = vld [vmem:[%s2728_s7 + $0xf8] sm:$0xff] }
 0x273   : > { %1463 = vmatprep.subr.mxu0 %v1380_v34  ;;  %1828 = vmatprep.subr.mxu1 %v1600_v33 }
 0x274   : > { %1464 = vmatpush2.msra.mxu0 %v1379_v35 }
 0x275   : > { %1465 = vmatprep.subr.mxu0 %v1378_v36 }
 0x276   : > { %1466 = vmatpush2.msra.mxu0 %v1377_v37 }
 0x277   : > { %1467 = vmatprep.subr.mxu0 %v1376_v38 }
 0x278   : > { %1468 = vmatpush2.msra.mxu0 %v1375_v45 }
 0x279   : > { %1469 = vmatprep.subr.mxu0 %v1374_v46 }
 0x27a   : > { %1470 = vmatpush2.msra.mxu0 %v1373_v48  ;;  %v1584_v48 = vld [vmem:[%s2728_s7 + $0x78] sm:$0xff] }
 0x27b   : > { %1471 = vmatprep.subr.mxu0 %v1372_v49  ;;  %v1599_v49 = vld [vmem:[%s2728_s7 + $0xf0] sm:$0xff] }
 0x27c   : > { %1472 = vmatpush2.msra.mxu0 %v1371_v54  ;;  %v1581_v54 = vld [vmem:[%s2728_s7 + $0x60] sm:$0xff] }
 0x27d   : > { %1473 = vmatprep.subr.mxu0 %v1370_v55  ;;  %v1596_v55 = vld [vmem:[%s2728_s7 + $0xd8] sm:$0xff] }
 0x27e   : > { %1474 = vmatpush2.msra.mxu0 %v1369_v58  ;;  %v1579_v58 = vld [vmem:[%s2728_s7 + $0x50] sm:$0xff] }
 0x27f   : > { %1475 = vmatprep.subr.mxu0 %v1368_v59  ;;  %v1594_v59 = vld [vmem:[%s2728_s7 + $0xc8] sm:$0xff] }
 0x280   : > { %1476 = vmatpush2.msra.mxu0 %v1367_v22  ;;  %v1576_v22 = vld [vmem:[%s2728_s7 + $0x38] sm:$0xff] }
 0x281   : > { %1477 = vmatprep.subr.mxu0 %v1366_v0  ;;  %v1591_v0 = vld [vmem:[%s2728_s7 + $0xb0] sm:$0xff] }
 0x282   : > { %1478 = vmatpush2.msra.mxu0 %v1365_v4  ;;  %v1589_v4 = vld [vmem:[%s2728_s7 + $0xa0] sm:$0xff] }
 0x283   : > { %1479 = vmatprep.subr.mxu0 %v1364_v6  ;;  %v1573_v6 = vld [vmem:[%s2728_s7 + $0x20] sm:$0xff] }
 0x284   : > { %1480 = vmatpush2.msra.mxu0 %v1363_v7  ;;  %v1588_v7 = vld [vmem:[%s2728_s7 + $0x98] sm:$0xff] }
 0x285   : > { %1481 = vmatprep.subr.mxu0 %v1362_v12  ;;  %v1585_v12 = vld [vmem:[%s2728_s7 + $0x80] sm:$0xff] }
 0x286   : > { %1482 = vmatpush2.msra.mxu0 %v1361_v14  ;;  %v1395_v14 = vld [vmem:[%s2727_s6] sm:$0x3] }
 0x287   : > { %1483 = vmatprep.subr.mxu0 %v1360_v17  ;;  %v1419_v16 = vrot.slane %v1395_v14, %v1403_v42 }
 0x288   : > { %1484 = vmatpush2.msra.mxu0 %v1359_v20 }
 0x289   : > { %1485 = vmatprep.subr.mxu0 %v1358_v23 }
 0x28a   : > { %1486 = vmatpush2.msra.mxu0 %v1357_v26 }
 0x28b   : > { %1487 = vmatprep.subr.mxu0 %v1356_v29  ;;  %v1601_v29 = vld [vmem:[%s2729_s8] sm:$0x1] }
 0x28c   : > { %1488 = vmatpush2.msra.mxu0 %v1355_v31 }
 0x30b   : > { %v1220_v47 = vpop.f32.mrf.mxu1 }
 0x30c   : > { %v1221_v50 = vadd.f32 %v1809_v44, %v1220_v47 }
 0x30d   : > { %v1222_v52 = vpop.f32.mrf.mxu1 }
 0x30e   : > { %v1229_v56 = vmax.f32 %v1221_v50, 0.0  ;;  %v1583_v50 = vld [vmem:[%s2728_s7 + $0x70] sm:$0xff]  ;;  %v1582_v52 = vld [vmem:[%s2728_s7 + $0x68] sm:$0xff] }
 0x30f   : > { %v1225_v57 = vpop.f32.mrf.mxu1 }
 0x310   : > { %v1243_v60 = vrot.slane %v1229_v56, %v1242_v51  ;;  %v1282_v61 = vcombine.high %v1229_v56, %v1229_v56  ;;  %v1226_v62 = vadd.f32 %v1809_v44, %v1225_v57  ;;  %1235 = vst.msk [vmem:[#allocation5] sm:$0x1] %vm2503_vm12, %v1229_v56  ;;  %v1407_v44 = vsub.s32 2, %v2484_v43  ;;  %v1580_v56 = vld [vmem:[%s2728_s7 + $0x58] sm:$0xff]  ;;  %v1595_v57 = vld [vmem:[%s2728_s7 + $0xd0] sm:$0xff] }
 0x311   : > { %v1227_v63 = vpop.f32.mrf.mxu1 }
 0x312   : > { %v1289_v1 = vrot.slane %v1282_v61, %v1242_v51  ;;  %v1230_v2 = vmax.f32 %v1226_v62, 0.0  ;;  %v1244_v3 = vcombine.high %v1243_v60, %v1243_v60  ;;  %v1251_v10 = vrot.slane %v1243_v60, %v1242_v51  ;;  %v1578_v60 = vld [vmem:[%s2728_s7 + $0x48] sm:$0xff]  ;;  %v1593_v61 = vld [vmem:[%s2728_s7 + $0xc0] sm:$0xff]  ;;  %v1592_v63 = vld [vmem:[%s2728_s7 + $0xb8] sm:$0xff] }
 0x313   : > { %v1577_v62 = vld [vmem:[%s2728_s7 + $0x40] sm:$0xff] }
 0x314   : > { %1321 = vst.msk [vmem:[#allocation5 + $0x2] sm:$0x1] %vm2503_vm12, %v1230_v2  ;;  %v1258_v8 = vrot.slane %v1244_v3, %v1242_v51  ;;  %v1299_v9 = vcombine.high %v1289_v1, %v1289_v1  ;;  %v1296_v5 = vrot.slane %v1289_v1, %v1242_v51  ;;  %v1266_v19 = vcombine.high %v1251_v10, %v1251_v10  ;;  %v1575_v1 = vld [vmem:[%s2728_s7 + $0x30] sm:$0xff]  ;;  %v1590_v2 = vld [vmem:[%s2728_s7 + $0xa8] sm:$0xff] }
 0x315   : > { %v1574_v3 = vld [vmem:[%s2728_s7 + $0x28] sm:$0xff]  ;;  %v1571_v10 = vld [vmem:[%s2728_s7 + $0x10] sm:$0xff] }
 0x316   : > { %1259 = vrot.lane.b32.xlu1 %v1258_v8, %s1935_s26  ;;  %v1306_v15 = vrot.slane %v1299_v9, %v1242_v51  ;;  %1298 = vst.msk [vmem:[#allocation5 + $0x1] sm:$0x1] %vm2503_vm12, %v1296_v5  ;;  %v1311_v24 = vcombine.high %v1296_v5, %v1296_v5  ;;  %v1274_v28 = vcombine.high %v1258_v8, %v1258_v8  ;;  %v1598_v51 = vld [vmem:[%s2728_s7 + $0xe8] sm:$0xff]  ;;  %v1572_v8 = vld [vmem:[%s2728_s7 + $0x18] sm:$0xff]  ;;  %v1587_v9 = vld [vmem:[%s2728_s7 + $0x90] sm:$0xff] }
 0x317   : > { %v1586_v5 = vld [vmem:[%s2728_s7 + $0x88] sm:$0xff] }
 0x318   : > { %1307 = vrot.lane.b32.xlu0 %v1306_v15, %s1935_s26  ;;  %v1316_v32 = vcombine.high %v1306_v15, %v1306_v15  ;;  %v1415_v15 = vrot.slane %v1395_v14, %v2604_v41 }
 0x31a   : > { %1267 = vrot.lane.b32.xlu1 %v1266_v19, %s1936_s16 }
 0x31c   : > { %1312 = vrot.lane.b32.xlu0 %v1311_v24, %s1936_s16 }
 0x31e   : > { %1275 = vrot.lane.b32.xlu1 %v1274_v28, %s1940_s21 }
 0x320   : > { %1317 = vrot.lane.b32.xlu0 %v1316_v32, %s1940_s21 }
 0x388   : > { %v1260_v34 = vpop.permute.xlu1 %1259 }
 0x389   : > { %1265 = vst.msk [vmem:[#allocation5] sm:$0x1] %vm1264_vm1, %v1260_v34 }
 0x38a   : > { %v1308_v35 = vpop.permute.xlu0 %1307 }
 0x38b   : > { %1310 = vst.msk [vmem:[#allocation5 + $0x1] sm:$0x1] %vm1264_vm1, %v1308_v35 }
 0x38c   : > { %v1268_v36 = vpop.permute.xlu1 %1267 }
 0x38d   : > { %1273 = vst.msk [vmem:[#allocation5] sm:$0x1] %vm1272_vm4, %v1268_v36 }
 0x38e   : > { %v1313_v37 = vpop.permute.xlu0 %1312 }
 0x38f   : > { %1315 = vst.msk [vmem:[#allocation5 + $0x1] sm:$0x1] %vm1272_vm4, %v1313_v37 }
 0x390   : > { %v1276_v38 = vpop.permute.xlu1 %1275 }
 0x391   : > { %1281 = vst.msk [vmem:[#allocation5] sm:$0x1] %vm1280_vm7, %v1276_v38 }
 0x392   : > { %v1318_v40 = vpop.permute.xlu0 %1317 }
 0x393   : > { %1320 = vst.msk [vmem:[#allocation5 + $0x1] sm:$0x1] %vm1280_vm7, %v1318_v40 }
 0x39a   : > { %v1322_v45 = vld [vmem:[#allocation5] sm:$0x7] }
 0x39b   : > { %v1400_v39 = vrot.slane %v1322_v45, %v2604_v41  ;;  %v1404_v46 = vrot.slane %v1322_v45, %v1403_v42  ;;  %v1408_v47 = vrot.slane %v1322_v45, %v1407_v44 }
 0x39d   : > { %1489 = vmatprep.mubr.f32.mxu0 %v1404_v46  ;;  %1812 = vmatmul.mubr.msk.f32.vlgmr.msra.gmra.mxu1 %vm1422_vm8, %v1408_v47 }
 0x39e   : > { %1490 = vmatmul.mubr.f32.vlgmr.msra.gmra.mxu0 %v1400_v39  ;;  %1829 = vmatpush3.msra.mxu1 %v1584_v48 }
 0x39f   : > { %1830 = vmatprep.subr.mxu1 %v1599_v49 }
 0x3a0   : > { %1831 = vmatpush3.msra.mxu1 %v1583_v50 }
 0x3a1   : > { %1832 = vmatprep.subr.mxu1 %v1598_v51 }
 0x3a2   : > { %1833 = vmatpush3.msra.mxu1 %v1582_v52 }
 0x3a3   : > { %1834 = vmatprep.subr.mxu1 %v1597_v53 }
 0x3a4   : > { %1835 = vmatpush3.msra.mxu1 %v1581_v54 }
 0x3a5   : > { %1836 = vmatprep.subr.mxu1 %v1596_v55 }
 0x3a6   : > { %1837 = vmatpush3.msra.mxu1 %v1580_v56 }
 0x3a7   : > { %1838 = vmatprep.subr.mxu1 %v1595_v57 }
 0x3a8   : > { %1839 = vmatpush3.msra.mxu1 %v1579_v58 }
 0x3a9   : > { %1840 = vmatprep.subr.mxu1 %v1594_v59 }
 0x3aa   : > { %1841 = vmatpush3.msra.mxu1 %v1578_v60 }
 0x3ab   : > { %1842 = vmatprep.subr.mxu1 %v1593_v61 }
 0x3ac   : > { %1843 = vmatpush3.msra.mxu1 %v1577_v62 }
 0x3ad   : > { %1844 = vmatprep.subr.mxu1 %v1592_v63 }
 0x3ae   : > { %1845 = vmatpush3.msra.mxu1 %v1576_v22 }
 0x3af   : > { %1846 = vmatprep.subr.mxu1 %v1591_v0 }
 0x3b0   : > { %1847 = vmatpush3.msra.mxu1 %v1575_v1 }
 0x3b1   : > { %1848 = vmatprep.subr.mxu1 %v1590_v2 }
 0x3b2   : > { %1849 = vmatpush3.msra.mxu1 %v1574_v3 }
 0x3b3   : > { %1850 = vmatprep.subr.mxu1 %v1589_v4 }
 0x3b4   : > { %1851 = vmatpush3.msra.mxu1 %v1573_v6 }
 0x3b5   : > { %1852 = vmatprep.subr.mxu1 %v1588_v7 }
 0x3b6   : > { %1853 = vmatpush3.msra.mxu1 %v1572_v8 }
 0x3b7   : > { %1854 = vmatprep.subr.mxu1 %v1587_v9 }
 0x3b8   : > { %1855 = vmatpush3.msra.mxu1 %v1571_v10 }
 0x3b9   : > { %1856 = vmatprep.subr.mxu1 %v1586_v5 }
 0x3ba   : > { %1857 = vmatpush3.msra.mxu1 %v1570_v11 }
 0x3bb   : > { %1858 = vmatprep.subr.mxu1 %v1585_v12 }
 0x3bc   : > { %1859 = vmatpush3.msra.mxu1 %v1569_v13 }
 0x45d   : > { %v1562_v17 = vpop.f32.mrf.mxu1 }
 0x45e   : > { %v1491_v18 = vpop.f32.mrf.mxu0 }
 0x45f   : > { %v1492_v19 = vadd.f32 %v1491_v18, %v1415_v15  ;;  %v1564_v24 = vpop.f32.mrf.mxu1 }
 0x460   : > { %v1493_v20 = vpop.f32.mrf.mxu0 }
 0x461   : > { %v1494_v21 = vadd.f32 %v1493_v20, %v1419_v16  ;;  %v1563_v23 = vadd.f32 %v1562_v17, %v1492_v19 }
 0x463   : > { %v1565_v25 = vadd.f32 %v1564_v24, %v1494_v21  ;;  %v1567_v27 = vmax.f32 %v1563_v23, 0.0 }
 0x465   : > { %v1568_v26 = vmax.f32 %v1565_v25, 0.0 }
 0x467   : > { %1666 = vmatprep.mubr.f32.mxu1 %v1568_v26 }
 0x468   : > { %1667 = vmatmul.mubr.f32.vlgmr.msra.gmra.mxu1 %v1567_v27 }
 0x528   : > { %v1860_v28 = vpop.f32.mrf.mxu1 }
 0x52a   : > { %v1861_v43 = vpop.f32.mrf.mxu1 }
 0x52b   : > { %v1862_v30 = vadd.f32 %v1861_v43, %v1860_v28 }
 0x52d   : > { %v1669_v31 = vadd.f32 %v1862_v30, %v1601_v29 }
 0x52f   : > { %v1675_v32 = vrot.slane %v1669_v31, %v2604_v41 }
 0x531   : > { %1676 = vst [vmem:[%s330_s17] sm:$0xff] %v1675_v32 }
 0x532 PF: > { %s19_s30 = sadd.s32 1, %s1924_s30  }
 0x533   : > { %p16_p4 = scmp.ge.s32.totalorder %s19_s30, 4  }
 0x535   :  { %18 = sbr.rel (!%p16_p4) target bundleno = 1 (0x1), region = 150 }

</bundles_post_ra>
